<compile_context>
chip_gen: v6e
topology: v6e:2x2x1
jax: 0.10.0
libtpu: 0.0.40
codegen_flags: <defaults>
</compile_context>

<pallas_src>
import jax
import jax.numpy as jnp
from jax.experimental import pallas as pl
from jax.experimental.pallas import tpu as pltpu

EPS = 1e-5
NOISE = 100      # generator input channels (and final output channels)
L_OUT = 16       # final temporal length
C_PAD = 128      # lane-padded width for the 100-wide channel dims


# ----------------------------------------------------------------------------
# Pallas kernel: whole network in one invocation
# ----------------------------------------------------------------------------
def _tgan_kernel(z_ref,
                 w1_ref, g1_ref, be1_ref,
                 w2_ref, g2_ref, be2_ref,
                 w3_ref, g3_ref, be3_ref,
                 w4_ref, g4_ref, be4_ref,
                 w5_ref, b5_ref,
                 out_ref):
    batch = z_ref.shape[0]

    def bn_relu_bf16(x, g_ref, be_ref):
        # Training-mode BatchNorm1d over all (batch*length) rows per channel.
        # Single-pass statistics (sum and sum-of-squares together,
        # var = E[x^2] - mean^2), folded into one scale/shift FMA, then ReLU,
        # then bf16 so the next MXU matmul consumes bf16 operands directly.
        inv_n = 1.0 / x.shape[0]
        mean = jnp.sum(x, axis=0, keepdims=True) * inv_n        # (1, C)
        ex2 = jnp.sum(x * x, axis=0, keepdims=True) * inv_n     # (1, C)
        var = ex2 - mean * mean
        scale = g_ref[...] * jax.lax.rsqrt(var + EPS)           # (1, C)
        shift = be_ref[...] - mean * scale                      # (1, C)
        return jnp.maximum(x * scale + shift, 0.0).astype(jnp.bfloat16)

    def conv_t(x, w_ref, c_out, l_in):
        # ConvTranspose1d(k=4, s=2, p=1): one consolidated bf16 matmul
        #   (l_in*B, C_in) x (C_in, 4*C_out)  ->  f32 (l_in*B, 4*C_out)
        # with the 4 kernel taps concatenated on the lane axis.  The scatter
        # o = 2*i - 1 + k is then pure VPU adds + one row-block concat
        # (no combine matmuls, nothing O(batch^2)):
        #   out[2j]   = tap1[j] + tap3[j-1]   (tap3 term absent at j = 0)
        #   out[2j+1] = tap2[j] + tap0[j+1]   (tap0 term absent at j = l_in-1)
        # Rows are time-major: input time i occupies rows [i*B, (i+1)*B).
        y = jnp.dot(x, w_ref[...], preferred_element_type=jnp.float32)

        def tap(k, i):  # tap k of input time i -> (B, c_out) f32, lane-aligned
            return y[i * batch:(i + 1) * batch, k * c_out:(k + 1) * c_out]

        blocks = []
        for j in range(l_in):
            even = tap(1, j)
            if j > 0:
                even = even + tap(3, j - 1)
            blocks.append(even)                  # output time 2j
            odd = tap(2, j)
            if j + 1 < l_in:
                odd = odd + tap(0, j + 1)
            blocks.append(odd)                   # output time 2j + 1
        return jnp.concatenate(blocks, axis=0)   # (2*l_in*B, c_out) f32

    # layer 1: ConvTranspose1d(100, 512, k=1, s=1) at L=1 is a plain matmul.
    # Conv biases of layers 1-4 are omitted: a per-channel constant is exactly
    # cancelled by the following training-mode BatchNorm's mean subtraction.
    x = jnp.dot(z_ref[...].astype(jnp.bfloat16), w1_ref[...],
                preferred_element_type=jnp.float32)                  # (B, 512)
    x = bn_relu_bf16(x, g1_ref, be1_ref)

    x = bn_relu_bf16(conv_t(x, w2_ref, 256, 1), g2_ref, be2_ref)     # (2B, 256)
    x = bn_relu_bf16(conv_t(x, w3_ref, 128, 2), g3_ref, be3_ref)     # (4B, 128)
    x = bn_relu_bf16(conv_t(x, w4_ref, 128, 4), g4_ref, be4_ref)     # (8B, 128)

    x = conv_t(x, w5_ref, C_PAD, 8)                                  # (16B, 128)
    # f32 tanh (v5e has no bf16 EUP); padded lanes are tanh(0 + 0) = 0 and get
    # sliced off on the host.  Single dense (16B, 128) store.
    out_ref[...] = jnp.tanh(x + b5_ref[...])


# ----------------------------------------------------------------------------
# host-side staging
# ----------------------------------------------------------------------------
def stage_params(raw):
    """Pack raw (PyTorch-layout) parameters into kernel-ready form:
    taps concatenated on the lane axis, bf16 matmul weights, 100->128 padding,
    BN-cancelled conv biases dropped."""
    (w1, b1, g1, be1,
     w2, b2, g2, be2,
     w3, b3, g3, be3,
     w4, b4, g4, be4,
     w5, b5) = raw

    def cat_taps(w):   # (4, C_in, C_out) -> (C_in, 4*C_out), taps lane-aligned
        return jnp.concatenate([w[k] for k in range(4)], axis=1)

    w1k = jnp.pad(w1[0], ((0, C_PAD - NOISE), (0, 0))).astype(jnp.bfloat16)
    w2k = cat_taps(w2).astype(jnp.bfloat16)                        # (512, 1024)
    w3k = cat_taps(w3).astype(jnp.bfloat16)                        # (256,  512)
    w4k = cat_taps(w4).astype(jnp.bfloat16)                        # (128,  512)
    w5k = cat_taps(jnp.pad(w5, ((0, 0), (0, 0),
                                (0, C_PAD - NOISE)))).astype(jnp.bfloat16)
    b5k = jnp.pad(b5, ((0, 0), (0, C_PAD - NOISE)))                # (1, 128) f32
    # b1..b4 intentionally dropped (exactly cancelled by the BatchNorm mean).
    return (w1k, g1, be1, w2k, g2, be2, w3k, g3, be3, w4k, g4, be4, w5k, b5k)


def temporal_generator(x, staged):
    (w1k, g1, be1, w2k, g2, be2, w3k, g3, be3,
     w4k, g4, be4, w5k, b5k) = staged

    z = x.reshape(-1, NOISE).astype(jnp.float32)       # PyTorch: x.view(-1, 100, 1)
    batch = z.shape[0]
    zp = jnp.pad(z, ((0, 0), (0, C_PAD - NOISE)))      # lane-pad 100 -> 128

    args = (zp,
            w1k, g1, be1,
            w2k, g2, be2,
            w3k, g3, be3,
            w4k, g4, be4,
            w5k, b5k)

    out = pl.pallas_call(
        _tgan_kernel,
        out_shape=jax.ShapeDtypeStruct((L_OUT * batch, C_PAD), jnp.float32),
        in_specs=[pl.BlockSpec(memory_space=pltpu.MemorySpace.VMEM)] * len(args),
        out_specs=pl.BlockSpec(memory_space=pltpu.MemorySpace.VMEM),
        # ~1.7 MB of bf16 params + O(B * 70 KB) activations: well inside the
        # scoped VMEM of v5e / v6e / v7x; 32 MiB gives headroom everywhere.
        compiler_params=pltpu.CompilerParams(vmem_limit_bytes=32 * 1024 * 1024),
    )(*args)

    # kernel rows are time-major (time, batch): free reshape + tiny host-side
    # transpose (<= 16*B*128*4 bytes) + lane slice 128 -> 100.
    return out.reshape(L_OUT, batch, C_PAD).transpose(1, 0, 2)[:, :, :NOISE]


# ----------------------------------------------------------------------------
# deterministic parameter init (xavier_uniform gain=sqrt(2) on conv weights,
# PyTorch-default conv biases, BN gamma=1 / beta=0)
# ----------------------------------------------------------------------------
def init_params(key):
    gain = 2.0 ** 0.5
    conv_specs = [(100, 512, 1), (512, 256, 4), (256, 128, 4),
                  (128, 128, 4), (128, 100, 4)]
    params = []
    for idx, (cin, cout, k) in enumerate(conv_specs):
        key, kw, kb = jax.random.split(key, 3)
        fan_in, fan_out = cout * k, cin * k        # PyTorch fans for ConvTranspose1d
        bound = gain * (6.0 / (fan_in + fan_out)) ** 0.5
        # stored as (K, C_in, C_out) so w[k] is the per-tap matmul weight
        w = jax.random.uniform(kw, (k, cin, cout), jnp.float32, -bound, bound)
        bb = 1.0 / (fan_in ** 0.5)
        b = jax.random.uniform(kb, (1, cout), jnp.float32, -bb, bb)
        params += [w, b]
        if idx < 4:  # BatchNorm after the first 4 transposed convs
            params += [jnp.ones((1, cout), jnp.float32),
                       jnp.zeros((1, cout), jnp.float32)]
    return params


# ----------------------------------------------------------------------------
# independent plain-JAX reference: original per-output-position formulation
# (with conv biases), bf16 matmul operands to match the kernel's MXU precision
# ----------------------------------------------------------------------------
def _reference_forward(x, raw):
    (w1, b1, g1, be1,
     w2, b2, g2, be2,
     w3, b3, g3, be3,
     w4, b4, g4, be4,
     w5, b5) = raw

    def mm(a, w):
        return jnp.dot(a.astype(jnp.bfloat16), w.astype(jnp.bfloat16),
                       preferred_element_type=jnp.float32)

    def bn_relu(xx, g, be):
        mean = jnp.mean(xx, axis=(0, 1), keepdims=True)
        var = jnp.mean((xx - mean) ** 2, axis=(0, 1), keepdims=True)
        y = (xx - mean) * jax.lax.rsqrt(var + EPS)
        return jnp.maximum(y * g.reshape(1, 1, -1) + be.reshape(1, 1, -1), 0.0)

    def conv_t(xx, w, b):
        # y[o] = sum_{i,k} x[i] @ W[k] + b,   o = 2*i - 1 + k
        l_in = xx.shape[0]
        ys = []
        for o in range(2 * l_in):
            acc = b
            for k in range(4):
                num = o + 1 - k
                if num % 2:
                    continue
                i = num // 2
                if 0 <= i < l_in:
                    acc = acc + mm(xx[i], w[k])
            ys.append(acc)
        return jnp.stack(ys, axis=0)

    z = x.reshape(-1, NOISE).astype(jnp.float32)
    B = z.shape[0]
    h = (mm(z, w1[0]) + b1).reshape(1, B, 512)
    h = bn_relu(h, g1, be1)
    h = bn_relu(conv_t(h, w2, b2), g2, be2)
    h = bn_relu(conv_t(h, w3, b3), g3, be3)
    h = bn_relu(conv_t(h, w4, b4), g4, be4)
    h = jnp.tanh(conv_t(h, w5, b5))            # (16, B, 100)
    return jnp.transpose(h, (1, 0, 2))         # (B, 16, 100)


if __name__ == "__main__":
    key = jax.random.PRNGKey(0)
    k_param, k_x = jax.random.split(key)
    raw = init_params(k_param)
    staged = stage_params(raw)

    B = 2
    x = jax.random.normal(k_x, (B, NOISE), jnp.float32)   # noise input

    out = jax.jit(temporal_generator)(x, staged)
    out = jax.block_until_ready(out)
    assert out.shape == (B, L_OUT, NOISE), out.shape
    assert bool(jnp.all(jnp.isfinite(out)))

    ref = jax.jit(_reference_forward)(x, raw)
    ref = jax.block_until_ready(ref)
    assert jnp.allclose(out, ref, atol=3e-2, rtol=3e-2), \
        float(jnp.max(jnp.abs(out - ref)))

    print("KERNEL_OK")
</pallas_src>

<mosaic_0001>
module attributes {stable_mosaic.version = 11 : i64} {
  func.func @_tgan_kernel(%arg0: memref<2x128xf32, #tpu.memory_space<vmem>>, %arg1: memref<128x512xbf16, #tpu.memory_space<vmem>>, %arg2: memref<1x512xf32, #tpu.memory_space<vmem>>, %arg3: memref<1x512xf32, #tpu.memory_space<vmem>>, %arg4: memref<512x1024xbf16, #tpu.memory_space<vmem>>, %arg5: memref<1x256xf32, #tpu.memory_space<vmem>>, %arg6: memref<1x256xf32, #tpu.memory_space<vmem>>, %arg7: memref<256x512xbf16, #tpu.memory_space<vmem>>, %arg8: memref<1x128xf32, #tpu.memory_space<vmem>>, %arg9: memref<1x128xf32, #tpu.memory_space<vmem>>, %arg10: memref<128x512xbf16, #tpu.memory_space<vmem>>, %arg11: memref<1x128xf32, #tpu.memory_space<vmem>>, %arg12: memref<1x128xf32, #tpu.memory_space<vmem>>, %arg13: memref<128x512xbf16, #tpu.memory_space<vmem>>, %arg14: memref<1x128xf32, #tpu.memory_space<vmem>>, %arg15: memref<32x128xf32, #tpu.memory_space<vmem>>) attributes {dimension_semantics = [], scalar_prefetch = 0 : i64, scratch_operands = 0 : i64, tpu.core_type = #tpu.core_type<tc>} {
    %c0 = arith.constant 0 : index
    %c0_0 = arith.constant 0 : index
    %0 = vector.load %arg0[%c0, %c0_0] : memref<2x128xf32, #tpu.memory_space<vmem>>, vector<2x128xf32>
    %1 = arith.truncf %0 : vector<2x128xf32> to vector<2x128xbf16>
    %c0_1 = arith.constant 0 : index
    %c0_2 = arith.constant 0 : index
    %2 = vector.load %arg1[%c0_1, %c0_2] : memref<128x512xbf16, #tpu.memory_space<vmem>>, vector<128x512xbf16>
    %cst = arith.constant dense<0.000000e+00> : vector<2x512xf32>
    %3 = tpu.matmul %1, %2, %cst {dimension_numbers = #tpu.dot_dimension_numbers<[1], [0], [0], [1], [0, 0, 1, 1], [], []>} : vector<2x128xbf16>, vector<128x512xbf16>, vector<2x512xf32> -> vector<2x512xf32>
    %cst_3 = arith.constant dense<0.000000e+00> : vector<512xf32>
    %4 = vector.multi_reduction <add>, %3, %cst_3 [0] : vector<2x512xf32> to vector<512xf32>
    %5 = vector.shape_cast %4 : vector<512xf32> to vector<1x512xf32>
    %cst_4 = arith.constant 5.000000e-01 : f32
    %6 = vector.broadcast %cst_4 : f32 to vector<1x512xf32>
    %7 = arith.mulf %5, %6 : vector<1x512xf32>
    %8 = arith.mulf %3, %3 : vector<2x512xf32>
    %cst_5 = arith.constant dense<0.000000e+00> : vector<512xf32>
    %9 = vector.multi_reduction <add>, %8, %cst_5 [0] : vector<2x512xf32> to vector<512xf32>
    %10 = vector.shape_cast %9 : vector<512xf32> to vector<1x512xf32>
    %cst_6 = arith.constant 5.000000e-01 : f32
    %11 = vector.broadcast %cst_6 : f32 to vector<1x512xf32>
    %12 = arith.mulf %10, %11 : vector<1x512xf32>
    %13 = arith.mulf %7, %7 : vector<1x512xf32>
    %14 = arith.subf %12, %13 : vector<1x512xf32>
    %c0_7 = arith.constant 0 : index
    %c0_8 = arith.constant 0 : index
    %15 = vector.load %arg2[%c0_7, %c0_8] : memref<1x512xf32, #tpu.memory_space<vmem>>, vector<1x512xf32>
    %cst_9 = arith.constant 9.99999974E-6 : f32
    %16 = vector.broadcast %cst_9 : f32 to vector<1x512xf32>
    %17 = arith.addf %14, %16 : vector<1x512xf32>
    %18 = math.rsqrt %17 : vector<1x512xf32>
    %19 = arith.mulf %15, %18 : vector<1x512xf32>
    %c0_10 = arith.constant 0 : index
    %c0_11 = arith.constant 0 : index
    %20 = vector.load %arg3[%c0_10, %c0_11] : memref<1x512xf32, #tpu.memory_space<vmem>>, vector<1x512xf32>
    %21 = arith.mulf %7, %19 : vector<1x512xf32>
    %22 = arith.subf %20, %21 : vector<1x512xf32>
    %23 = vector.broadcast %19 : vector<1x512xf32> to vector<2x512xf32>
    %24 = arith.mulf %3, %23 : vector<2x512xf32>
    %25 = vector.broadcast %22 : vector<1x512xf32> to vector<2x512xf32>
    %26 = arith.addf %24, %25 : vector<2x512xf32>
    %cst_12 = arith.constant 0.000000e+00 : f32
    %27 = vector.broadcast %cst_12 : f32 to vector<2x512xf32>
    %28 = arith.maximumf %26, %27 : vector<2x512xf32>
    %29 = arith.truncf %28 : vector<2x512xf32> to vector<2x512xbf16>
    %c0_13 = arith.constant 0 : index
    %c0_14 = arith.constant 0 : index
    %30 = vector.load %arg4[%c0_13, %c0_14] : memref<512x1024xbf16, #tpu.memory_space<vmem>>, vector<512x1024xbf16>
    %cst_15 = arith.constant dense<0.000000e+00> : vector<2x1024xf32>
    %31 = tpu.matmul %29, %30, %cst_15 {dimension_numbers = #tpu.dot_dimension_numbers<[1], [0], [0], [1], [0, 0, 1, 1], [], []>} : vector<2x512xbf16>, vector<512x1024xbf16>, vector<2x1024xf32> -> vector<2x1024xf32>
    %32 = vector.extract_strided_slice %31 {offsets = [0, 256], sizes = [2, 256], strides = [1, 1]} : vector<2x1024xf32> to vector<2x256xf32>
    %33 = vector.extract_strided_slice %31 {offsets = [0, 512], sizes = [2, 256], strides = [1, 1]} : vector<2x1024xf32> to vector<2x256xf32>
    %34 = tpu.concatenate %32, %33 in 0 : vector<2x256xf32>, vector<2x256xf32> -> vector<4x256xf32>
    %cst_16 = arith.constant dense<0.000000e+00> : vector<256xf32>
    %35 = vector.multi_reduction <add>, %34, %cst_16 [0] : vector<4x256xf32> to vector<256xf32>
    %36 = vector.shape_cast %35 : vector<256xf32> to vector<1x256xf32>
    %cst_17 = arith.constant 2.500000e-01 : f32
    %37 = vector.broadcast %cst_17 : f32 to vector<1x256xf32>
    %38 = arith.mulf %36, %37 : vector<1x256xf32>
    %39 = arith.mulf %34, %34 : vector<4x256xf32>
    %cst_18 = arith.constant dense<0.000000e+00> : vector<256xf32>
    %40 = vector.multi_reduction <add>, %39, %cst_18 [0] : vector<4x256xf32> to vector<256xf32>
    %41 = vector.shape_cast %40 : vector<256xf32> to vector<1x256xf32>
    %cst_19 = arith.constant 2.500000e-01 : f32
    %42 = vector.broadcast %cst_19 : f32 to vector<1x256xf32>
    %43 = arith.mulf %41, %42 : vector<1x256xf32>
    %44 = arith.mulf %38, %38 : vector<1x256xf32>
    %45 = arith.subf %43, %44 : vector<1x256xf32>
    %c0_20 = arith.constant 0 : index
    %c0_21 = arith.constant 0 : index
    %46 = vector.load %arg5[%c0_20, %c0_21] : memref<1x256xf32, #tpu.memory_space<vmem>>, vector<1x256xf32>
    %cst_22 = arith.constant 9.99999974E-6 : f32
    %47 = vector.broadcast %cst_22 : f32 to vector<1x256xf32>
    %48 = arith.addf %45, %47 : vector<1x256xf32>
    %49 = math.rsqrt %48 : vector<1x256xf32>
    %50 = arith.mulf %46, %49 : vector<1x256xf32>
    %c0_23 = arith.constant 0 : index
    %c0_24 = arith.constant 0 : index
    %51 = vector.load %arg6[%c0_23, %c0_24] : memref<1x256xf32, #tpu.memory_space<vmem>>, vector<1x256xf32>
    %52 = arith.mulf %38, %50 : vector<1x256xf32>
    %53 = arith.subf %51, %52 : vector<1x256xf32>
    %54 = vector.broadcast %50 : vector<1x256xf32> to vector<4x256xf32>
    %55 = arith.mulf %34, %54 : vector<4x256xf32>
    %56 = vector.broadcast %53 : vector<1x256xf32> to vector<4x256xf32>
    %57 = arith.addf %55, %56 : vector<4x256xf32>
    %cst_25 = arith.constant 0.000000e+00 : f32
    %58 = vector.broadcast %cst_25 : f32 to vector<4x256xf32>
    %59 = arith.maximumf %57, %58 : vector<4x256xf32>
    %60 = arith.truncf %59 : vector<4x256xf32> to vector<4x256xbf16>
    %c0_26 = arith.constant 0 : index
    %c0_27 = arith.constant 0 : index
    %61 = vector.load %arg7[%c0_26, %c0_27] : memref<256x512xbf16, #tpu.memory_space<vmem>>, vector<256x512xbf16>
    %cst_28 = arith.constant dense<0.000000e+00> : vector<4x512xf32>
    %62 = tpu.matmul %60, %61, %cst_28 {dimension_numbers = #tpu.dot_dimension_numbers<[1], [0], [0], [1], [0, 0, 1, 1], [], []>} : vector<4x256xbf16>, vector<256x512xbf16>, vector<4x512xf32> -> vector<4x512xf32>
    %63 = vector.extract_strided_slice %62 {offsets = [0, 128], sizes = [2, 128], strides = [1, 1]} : vector<4x512xf32> to vector<2x128xf32>
    %64 = vector.extract_strided_slice %62 {offsets = [0, 256], sizes = [2, 128], strides = [1, 1]} : vector<4x512xf32> to vector<2x128xf32>
    %65 = vector.extract_strided_slice %62 {offsets = [2, 0], sizes = [2, 128], strides = [1, 1]} : vector<4x512xf32> to vector<2x128xf32>
    %66 = arith.addf %64, %65 : vector<2x128xf32>
    %67 = vector.extract_strided_slice %62 {offsets = [2, 128], sizes = [2, 128], strides = [1, 1]} : vector<4x512xf32> to vector<2x128xf32>
    %68 = vector.extract_strided_slice %62 {offsets = [0, 384], sizes = [2, 128], strides = [1, 1]} : vector<4x512xf32> to vector<2x128xf32>
    %69 = arith.addf %67, %68 : vector<2x128xf32>
    %70 = vector.extract_strided_slice %62 {offsets = [2, 256], sizes = [2, 128], strides = [1, 1]} : vector<4x512xf32> to vector<2x128xf32>
    %71 = tpu.concatenate %63, %66, %69, %70 in 0 : vector<2x128xf32>, vector<2x128xf32>, vector<2x128xf32>, vector<2x128xf32> -> vector<8x128xf32>
    %cst_29 = arith.constant dense<0.000000e+00> : vector<128xf32>
    %72 = vector.multi_reduction <add>, %71, %cst_29 [0] : vector<8x128xf32> to vector<128xf32>
    %73 = vector.shape_cast %72 : vector<128xf32> to vector<1x128xf32>
    %cst_30 = arith.constant 1.250000e-01 : f32
    %74 = vector.broadcast %cst_30 : f32 to vector<1x128xf32>
    %75 = arith.mulf %73, %74 : vector<1x128xf32>
    %76 = arith.mulf %71, %71 : vector<8x128xf32>
    %cst_31 = arith.constant dense<0.000000e+00> : vector<128xf32>
    %77 = vector.multi_reduction <add>, %76, %cst_31 [0] : vector<8x128xf32> to vector<128xf32>
    %78 = vector.shape_cast %77 : vector<128xf32> to vector<1x128xf32>
    %cst_32 = arith.constant 1.250000e-01 : f32
    %79 = vector.broadcast %cst_32 : f32 to vector<1x128xf32>
    %80 = arith.mulf %78, %79 : vector<1x128xf32>
    %81 = arith.mulf %75, %75 : vector<1x128xf32>
    %82 = arith.subf %80, %81 : vector<1x128xf32>
    %c0_33 = arith.constant 0 : index
    %c0_34 = arith.constant 0 : index
    %83 = vector.load %arg8[%c0_33, %c0_34] : memref<1x128xf32, #tpu.memory_space<vmem>>, vector<1x128xf32>
    %cst_35 = arith.constant 9.99999974E-6 : f32
    %84 = vector.broadcast %cst_35 : f32 to vector<1x128xf32>
    %85 = arith.addf %82, %84 : vector<1x128xf32>
    %86 = math.rsqrt %85 : vector<1x128xf32>
    %87 = arith.mulf %83, %86 : vector<1x128xf32>
    %c0_36 = arith.constant 0 : index
    %c0_37 = arith.constant 0 : index
    %88 = vector.load %arg9[%c0_36, %c0_37] : memref<1x128xf32, #tpu.memory_space<vmem>>, vector<1x128xf32>
    %89 = arith.mulf %75, %87 : vector<1x128xf32>
    %90 = arith.subf %88, %89 : vector<1x128xf32>
    %91 = vector.broadcast %87 : vector<1x128xf32> to vector<8x128xf32>
    %92 = arith.mulf %71, %91 : vector<8x128xf32>
    %93 = vector.broadcast %90 : vector<1x128xf32> to vector<8x128xf32>
    %94 = arith.addf %92, %93 : vector<8x128xf32>
    %cst_38 = arith.constant 0.000000e+00 : f32
    %95 = vector.broadcast %cst_38 : f32 to vector<8x128xf32>
    %96 = arith.maximumf %94, %95 : vector<8x128xf32>
    %97 = arith.truncf %96 : vector<8x128xf32> to vector<8x128xbf16>
    %c0_39 = arith.constant 0 : index
    %c0_40 = arith.constant 0 : index
    %98 = vector.load %arg10[%c0_39, %c0_40] : memref<128x512xbf16, #tpu.memory_space<vmem>>, vector<128x512xbf16>
    %cst_41 = arith.constant dense<0.000000e+00> : vector<8x512xf32>
    %99 = tpu.matmul %97, %98, %cst_41 {dimension_numbers = #tpu.dot_dimension_numbers<[1], [0], [0], [1], [0, 0, 1, 1], [], []>} : vector<8x128xbf16>, vector<128x512xbf16>, vector<8x512xf32> -> vector<8x512xf32>
    %100 = vector.extract_strided_slice %99 {offsets = [0, 128], sizes = [2, 128], strides = [1, 1]} : vector<8x512xf32> to vector<2x128xf32>
    %101 = vector.extract_strided_slice %99 {offsets = [0, 256], sizes = [2, 128], strides = [1, 1]} : vector<8x512xf32> to vector<2x128xf32>
    %102 = vector.extract_strided_slice %99 {offsets = [2, 0], sizes = [2, 128], strides = [1, 1]} : vector<8x512xf32> to vector<2x128xf32>
    %103 = arith.addf %101, %102 : vector<2x128xf32>
    %104 = vector.extract_strided_slice %99 {offsets = [2, 128], sizes = [2, 128], strides = [1, 1]} : vector<8x512xf32> to vector<2x128xf32>
    %105 = vector.extract_strided_slice %99 {offsets = [0, 384], sizes = [2, 128], strides = [1, 1]} : vector<8x512xf32> to vector<2x128xf32>
    %106 = arith.addf %104, %105 : vector<2x128xf32>
    %107 = vector.extract_strided_slice %99 {offsets = [2, 256], sizes = [2, 128], strides = [1, 1]} : vector<8x512xf32> to vector<2x128xf32>
    %108 = vector.extract_strided_slice %99 {offsets = [4, 0], sizes = [2, 128], strides = [1, 1]} : vector<8x512xf32> to vector<2x128xf32>
    %109 = arith.addf %107, %108 : vector<2x128xf32>
    %110 = vector.extract_strided_slice %99 {offsets = [4, 128], sizes = [2, 128], strides = [1, 1]} : vector<8x512xf32> to vector<2x128xf32>
    %111 = vector.extract_strided_slice %99 {offsets = [2, 384], sizes = [2, 128], strides = [1, 1]} : vector<8x512xf32> to vector<2x128xf32>
    %112 = arith.addf %110, %111 : vector<2x128xf32>
    %113 = vector.extract_strided_slice %99 {offsets = [4, 256], sizes = [2, 128], strides = [1, 1]} : vector<8x512xf32> to vector<2x128xf32>
    %114 = vector.extract_strided_slice %99 {offsets = [6, 0], sizes = [2, 128], strides = [1, 1]} : vector<8x512xf32> to vector<2x128xf32>
    %115 = arith.addf %113, %114 : vector<2x128xf32>
    %116 = vector.extract_strided_slice %99 {offsets = [6, 128], sizes = [2, 128], strides = [1, 1]} : vector<8x512xf32> to vector<2x128xf32>
    %117 = vector.extract_strided_slice %99 {offsets = [4, 384], sizes = [2, 128], strides = [1, 1]} : vector<8x512xf32> to vector<2x128xf32>
    %118 = arith.addf %116, %117 : vector<2x128xf32>
    %119 = vector.extract_strided_slice %99 {offsets = [6, 256], sizes = [2, 128], strides = [1, 1]} : vector<8x512xf32> to vector<2x128xf32>
    %120 = tpu.concatenate %100, %103, %106, %109, %112, %115, %118, %119 in 0 : vector<2x128xf32>, vector<2x128xf32>, vector<2x128xf32>, vector<2x128xf32>, vector<2x128xf32>, vector<2x128xf32>, vector<2x128xf32>, vector<2x128xf32> -> vector<16x128xf32>
    %cst_42 = arith.constant dense<0.000000e+00> : vector<128xf32>
    %121 = vector.multi_reduction <add>, %120, %cst_42 [0] : vector<16x128xf32> to vector<128xf32>
    %122 = vector.shape_cast %121 : vector<128xf32> to vector<1x128xf32>
    %cst_43 = arith.constant 6.250000e-02 : f32
    %123 = vector.broadcast %cst_43 : f32 to vector<1x128xf32>
    %124 = arith.mulf %122, %123 : vector<1x128xf32>
    %125 = arith.mulf %120, %120 : vector<16x128xf32>
    %cst_44 = arith.constant dense<0.000000e+00> : vector<128xf32>
    %126 = vector.multi_reduction <add>, %125, %cst_44 [0] : vector<16x128xf32> to vector<128xf32>
    %127 = vector.shape_cast %126 : vector<128xf32> to vector<1x128xf32>
    %cst_45 = arith.constant 6.250000e-02 : f32
    %128 = vector.broadcast %cst_45 : f32 to vector<1x128xf32>
    %129 = arith.mulf %127, %128 : vector<1x128xf32>
    %130 = arith.mulf %124, %124 : vector<1x128xf32>
    %131 = arith.subf %129, %130 : vector<1x128xf32>
    %c0_46 = arith.constant 0 : index
    %c0_47 = arith.constant 0 : index
    %132 = vector.load %arg11[%c0_46, %c0_47] : memref<1x128xf32, #tpu.memory_space<vmem>>, vector<1x128xf32>
    %cst_48 = arith.constant 9.99999974E-6 : f32
    %133 = vector.broadcast %cst_48 : f32 to vector<1x128xf32>
    %134 = arith.addf %131, %133 : vector<1x128xf32>
    %135 = math.rsqrt %134 : vector<1x128xf32>
    %136 = arith.mulf %132, %135 : vector<1x128xf32>
    %c0_49 = arith.constant 0 : index
    %c0_50 = arith.constant 0 : index
    %137 = vector.load %arg12[%c0_49, %c0_50] : memref<1x128xf32, #tpu.memory_space<vmem>>, vector<1x128xf32>
    %138 = arith.mulf %124, %136 : vector<1x128xf32>
    %139 = arith.subf %137, %138 : vector<1x128xf32>
    %140 = vector.broadcast %136 : vector<1x128xf32> to vector<16x128xf32>
    %141 = arith.mulf %120, %140 : vector<16x128xf32>
    %142 = vector.broadcast %139 : vector<1x128xf32> to vector<16x128xf32>
    %143 = arith.addf %141, %142 : vector<16x128xf32>
    %cst_51 = arith.constant 0.000000e+00 : f32
    %144 = vector.broadcast %cst_51 : f32 to vector<16x128xf32>
    %145 = arith.maximumf %143, %144 : vector<16x128xf32>
    %146 = arith.truncf %145 : vector<16x128xf32> to vector<16x128xbf16>
    %c0_52 = arith.constant 0 : index
    %c0_53 = arith.constant 0 : index
    %147 = vector.load %arg13[%c0_52, %c0_53] : memref<128x512xbf16, #tpu.memory_space<vmem>>, vector<128x512xbf16>
    %cst_54 = arith.constant dense<0.000000e+00> : vector<16x512xf32>
    %148 = tpu.matmul %146, %147, %cst_54 {dimension_numbers = #tpu.dot_dimension_numbers<[1], [0], [0], [1], [0, 0, 1, 1], [], []>} : vector<16x128xbf16>, vector<128x512xbf16>, vector<16x512xf32> -> vector<16x512xf32>
    %149 = vector.extract_strided_slice %148 {offsets = [0, 128], sizes = [2, 128], strides = [1, 1]} : vector<16x512xf32> to vector<2x128xf32>
    %150 = vector.extract_strided_slice %148 {offsets = [0, 256], sizes = [2, 128], strides = [1, 1]} : vector<16x512xf32> to vector<2x128xf32>
    %151 = vector.extract_strided_slice %148 {offsets = [2, 0], sizes = [2, 128], strides = [1, 1]} : vector<16x512xf32> to vector<2x128xf32>
    %152 = arith.addf %150, %151 : vector<2x128xf32>
    %153 = vector.extract_strided_slice %148 {offsets = [2, 128], sizes = [2, 128], strides = [1, 1]} : vector<16x512xf32> to vector<2x128xf32>
    %154 = vector.extract_strided_slice %148 {offsets = [0, 384], sizes = [2, 128], strides = [1, 1]} : vector<16x512xf32> to vector<2x128xf32>
    %155 = arith.addf %153, %154 : vector<2x128xf32>
    %156 = vector.extract_strided_slice %148 {offsets = [2, 256], sizes = [2, 128], strides = [1, 1]} : vector<16x512xf32> to vector<2x128xf32>
    %157 = vector.extract_strided_slice %148 {offsets = [4, 0], sizes = [2, 128], strides = [1, 1]} : vector<16x512xf32> to vector<2x128xf32>
    %158 = arith.addf %156, %157 : vector<2x128xf32>
    %159 = vector.extract_strided_slice %148 {offsets = [4, 128], sizes = [2, 128], strides = [1, 1]} : vector<16x512xf32> to vector<2x128xf32>
    %160 = vector.extract_strided_slice %148 {offsets = [2, 384], sizes = [2, 128], strides = [1, 1]} : vector<16x512xf32> to vector<2x128xf32>
    %161 = arith.addf %159, %160 : vector<2x128xf32>
    %162 = vector.extract_strided_slice %148 {offsets = [4, 256], sizes = [2, 128], strides = [1, 1]} : vector<16x512xf32> to vector<2x128xf32>
    %163 = vector.extract_strided_slice %148 {offsets = [6, 0], sizes = [2, 128], strides = [1, 1]} : vector<16x512xf32> to vector<2x128xf32>
    %164 = arith.addf %162, %163 : vector<2x128xf32>
    %165 = vector.extract_strided_slice %148 {offsets = [6, 128], sizes = [2, 128], strides = [1, 1]} : vector<16x512xf32> to vector<2x128xf32>
    %166 = vector.extract_strided_slice %148 {offsets = [4, 384], sizes = [2, 128], strides = [1, 1]} : vector<16x512xf32> to vector<2x128xf32>
    %167 = arith.addf %165, %166 : vector<2x128xf32>
    %168 = vector.extract_strided_slice %148 {offsets = [6, 256], sizes = [2, 128], strides = [1, 1]} : vector<16x512xf32> to vector<2x128xf32>
    %169 = vector.extract_strided_slice %148 {offsets = [8, 0], sizes = [2, 128], strides = [1, 1]} : vector<16x512xf32> to vector<2x128xf32>
    %170 = arith.addf %168, %169 : vector<2x128xf32>
    %171 = vector.extract_strided_slice %148 {offsets = [8, 128], sizes = [2, 128], strides = [1, 1]} : vector<16x512xf32> to vector<2x128xf32>
    %172 = vector.extract_strided_slice %148 {offsets = [6, 384], sizes = [2, 128], strides = [1, 1]} : vector<16x512xf32> to vector<2x128xf32>
    %173 = arith.addf %171, %172 : vector<2x128xf32>
    %174 = vector.extract_strided_slice %148 {offsets = [8, 256], sizes = [2, 128], strides = [1, 1]} : vector<16x512xf32> to vector<2x128xf32>
    %175 = vector.extract_strided_slice %148 {offsets = [10, 0], sizes = [2, 128], strides = [1, 1]} : vector<16x512xf32> to vector<2x128xf32>
    %176 = arith.addf %174, %175 : vector<2x128xf32>
    %177 = vector.extract_strided_slice %148 {offsets = [10, 128], sizes = [2, 128], strides = [1, 1]} : vector<16x512xf32> to vector<2x128xf32>
    %178 = vector.extract_strided_slice %148 {offsets = [8, 384], sizes = [2, 128], strides = [1, 1]} : vector<16x512xf32> to vector<2x128xf32>
    %179 = arith.addf %177, %178 : vector<2x128xf32>
    %180 = vector.extract_strided_slice %148 {offsets = [10, 256], sizes = [2, 128], strides = [1, 1]} : vector<16x512xf32> to vector<2x128xf32>
    %181 = vector.extract_strided_slice %148 {offsets = [12, 0], sizes = [2, 128], strides = [1, 1]} : vector<16x512xf32> to vector<2x128xf32>
    %182 = arith.addf %180, %181 : vector<2x128xf32>
    %183 = vector.extract_strided_slice %148 {offsets = [12, 128], sizes = [2, 128], strides = [1, 1]} : vector<16x512xf32> to vector<2x128xf32>
    %184 = vector.extract_strided_slice %148 {offsets = [10, 384], sizes = [2, 128], strides = [1, 1]} : vector<16x512xf32> to vector<2x128xf32>
    %185 = arith.addf %183, %184 : vector<2x128xf32>
    %186 = vector.extract_strided_slice %148 {offsets = [12, 256], sizes = [2, 128], strides = [1, 1]} : vector<16x512xf32> to vector<2x128xf32>
    %187 = vector.extract_strided_slice %148 {offsets = [14, 0], sizes = [2, 128], strides = [1, 1]} : vector<16x512xf32> to vector<2x128xf32>
    %188 = arith.addf %186, %187 : vector<2x128xf32>
    %189 = vector.extract_strided_slice %148 {offsets = [14, 128], sizes = [2, 128], strides = [1, 1]} : vector<16x512xf32> to vector<2x128xf32>
    %190 = vector.extract_strided_slice %148 {offsets = [12, 384], sizes = [2, 128], strides = [1, 1]} : vector<16x512xf32> to vector<2x128xf32>
    %191 = arith.addf %189, %190 : vector<2x128xf32>
    %192 = vector.extract_strided_slice %148 {offsets = [14, 256], sizes = [2, 128], strides = [1, 1]} : vector<16x512xf32> to vector<2x128xf32>
    %193 = tpu.concatenate %149, %152, %155, %158, %161, %164, %167, %170, %173, %176, %179, %182, %185, %188, %191, %192 in 0 : vector<2x128xf32>, vector<2x128xf32>, vector<2x128xf32>, vector<2x128xf32>, vector<2x128xf32>, vector<2x128xf32>, vector<2x128xf32>, vector<2x128xf32>, vector<2x128xf32>, vector<2x128xf32>, vector<2x128xf32>, vector<2x128xf32>, vector<2x128xf32>, vector<2x128xf32>, vector<2x128xf32>, vector<2x128xf32> -> vector<32x128xf32>
    %c0_55 = arith.constant 0 : index
    %c0_56 = arith.constant 0 : index
    %194 = vector.load %arg14[%c0_55, %c0_56] : memref<1x128xf32, #tpu.memory_space<vmem>>, vector<1x128xf32>
    %195 = vector.broadcast %194 : vector<1x128xf32> to vector<32x128xf32>
    %196 = arith.addf %193, %195 : vector<32x128xf32>
    %197 = math.tanh %196 : vector<32x128xf32>
    %c0_57 = arith.constant 0 : index
    %c0_58 = arith.constant 0 : index
    %198 = vector.load %arg15[%c0_57, %c0_58] : memref<32x128xf32, #tpu.memory_space<vmem>>, vector<32x128xf32>
    tpu.vector_store %arg15[%c0_57, %c0_58], %197 {strides = array<i32>} : memref<32x128xf32, #tpu.memory_space<vmem>>, vector<32x128xf32>,
    return
  }
}

</mosaic_0001>

<bundles_post_ra>
// kernel: temporal_generator.1
= control target key start
LH: loop header
LB: loop body
LE: loop exit
PB: predicated region body
PF: predicated region fallthrough
CT: control target
= control target key end

     0   :  { %20 = vsyncpa [#allocation3], 0  ;;  %s3849_s0 = inlined_call_operand.vmem [shape: f32[2,128], index: 0, kind: input, shape index: {}]   ;;  %s3850_s1 = inlined_call_operand.hbm [shape: bf16[128,512], index: 1, kind: input, shape index: {}]   ;;  %s3851_s2 = inlined_call_operand.vmem [shape: f32[1,512], index: 2, kind: input, shape index: {}]   ;;  %s3852_s3 = inlined_call_operand.vmem [shape: f32[1,512], index: 3, kind: input, shape index: {}]   ;;  %s3853_s4 = inlined_call_operand.hbm [shape: bf16[512,1024], index: 4, kind: input, shape index: {}]   ;;  %s3854_s5 = inlined_call_operand.vmem [shape: f32[1,256], index: 5, kind: input, shape index: {}]   ;;  %s3855_s6 = inlined_call_operand.vmem [shape: f32[1,256], index: 6, kind: input, shape index: {}]   ;;  %s3856_s7 = inlined_call_operand.hbm [shape: bf16[256,512], index: 7, kind: input, shape index: {}]   ;;  %s3857_s8 = inlined_call_operand.vmem [shape: f32[1,128], index: 8, kind: input, shape index: {}]   ;;  %s3858_s9 = inlined_call_operand.vmem [shape: f32[1,128], index: 9, kind: input, shape index: {}]   ;;  %s3859_s10 = inlined_call_operand.hbm [shape: bf16[128,512], index: 10, kind: input, shape index: {}]   ;;  %s3860_s11 = inlined_call_operand.vmem [shape: f32[1,128], index: 11, kind: input, shape index: {}]   ;;  %s3861_s12 = inlined_call_operand.vmem [shape: f32[1,128], index: 12, kind: input, shape index: {}]   ;;  %s3862_s13 = inlined_call_operand.hbm [shape: bf16[128,512], index: 13, kind: input, shape index: {}]   ;;  %s3863_s14 = inlined_call_operand.vmem [shape: f32[1,128], index: 14, kind: input, shape index: {}]   ;;  %s3864_s15 = inlined_call_operand.vmem [shape: f32[32,128], index: 15, kind: output, shape index: {}]  }
   0x1   :  { %21 = vsyncpa [#allocation5], 0 }
   0x2   :  { %22 = vsyncpa [#allocation8], 0  ;;  %s3566_s18 = smov [#allocation4]  }
   0x3   :  { %s46_s19 = sshll.u32 %s3566_s18, 4  ;;  %s47_s19 = int_to_ptr.vmem [resolvable:$true] %s46_s19 }
   0x4   :  { %s3468_s20 = scalar_lea.vmem %s47_s19, 32768  ;;  %p3473_p1 = scmp.lt.s32.totalorder %s47_s19, %s47_s19 }
   0x5   :  { %p3469_p0 = scmp.ne.s32.totalorder %s47_s19, %s3468_s20  ;;  %p3474_p2 = scmp.lt.s32.totalorder %s3468_s20, %s3468_s20 }
   0x7   :  { %p3475_p3 = por %p3474_p2, %p3473_p1 }
   0x9   :  { %p3476_p4 = pnand %p3475_p3, %p3469_p0 }
   0xb   :  { %3479 = shalt.err (!%p3476_p4)
}
   0xc   :  { %s3567_s21 = smov 512   ;;  %s3568_s22 = smov 32  }
   0xd   :  { %52 = dma.hbm_to_vmem [thread:$0]  %s3853_s4, 32768, %s47_s19, [#allocation5], %s3567_s21, %s3567_s21, %s3568_s22  }
   0xe   :  { %s3569_s25 = smov [#allocation7]   ;;  %s3570_s27 = smov [#allocation2]  }
   0xf   :  { %s78_s26 = sshll.u32 %s3569_s25, 4  ;;  %s30_s28 = sshll.u32 %s3570_s27, 4  ;;  %s79_s26 = int_to_ptr.vmem [resolvable:$true] %s78_s26  ;;  %s31_s28 = int_to_ptr.vmem [resolvable:$true] %s30_s28 }
  0x10   :  { %s3488_s29 = scalar_lea.vmem %s79_s26, 4096  ;;  %p3493_p6 = scmp.lt.s32.totalorder %s79_s26, %s79_s26 }
  0x11   :  { %p3489_p5 = scmp.ne.s32.totalorder %s79_s26, %s3488_s29  ;;  %p3494_p7 = scmp.lt.s32.totalorder %s3488_s29, %s3488_s29 }
  0x13   :  { %p3495_p8 = por %p3494_p7, %p3493_p6 }
  0x15   :  { %p3496_p9 = pnand %p3495_p8, %p3489_p5 }
  0x17   :  { %3499 = shalt.err (!%p3496_p9)
}
  0x18   :  { %s3571_s30 = smov 256   ;;  %s3572_s16 = smov 16  }
  0x19   :  { %84 = dma.hbm_to_vmem [thread:$0]  %s3859_s10, 4096, %s79_s26, [#allocation8], %s3571_s30, %s3571_s30, %s3572_s16  }
  0x1a   :  { %s3508_s4 = scalar_lea.vmem %s31_s28, 4096  ;;  %p3513_p11 = scmp.lt.s32.totalorder %s31_s28, %s31_s28 }
  0x1b   :  { %p3509_p10 = scmp.ne.s32.totalorder %s31_s28, %s3508_s4  ;;  %p3514_p12 = scmp.lt.s32.totalorder %s3508_s4, %s3508_s4 }
  0x1d   :  { %p3515_p13 = por %p3514_p12, %p3513_p11 }
  0x1f   :  { %p3516_p0 = pnand %p3515_p13, %p3509_p10 }
  0x21   :  { %3519 = shalt.err (!%p3516_p0)
}
  0x22   :  { %36 = dma.hbm_to_vmem [thread:$0]  %s3850_s1, 4096, %s31_s28, [#allocation3], %s3571_s30, %s3571_s30, %s3572_s16  }
  0x23   :  { %s3573_s21 = smov [#allocation6]   ;;  %s3574_s23 = smov [#allocation9]  }
  0x24   :  { %s62_s22 = sshll.u32 %s3573_s21, 4  ;;  %s94_s10 = sshll.u32 %s3574_s23, 4  ;;  %s63_s22 = int_to_ptr.vmem [resolvable:$true] %s62_s22  ;;  %s95_s10 = int_to_ptr.vmem [resolvable:$true] %s94_s10 }
  0x25   :  { %s3528_s24 = scalar_lea.vmem %s63_s22, 8192  ;;  %p3533_p2 = scmp.lt.s32.totalorder %s63_s22, %s63_s22 }
  0x26   :  { %p3529_p1 = scmp.ne.s32.totalorder %s63_s22, %s3528_s24  ;;  %p3534_p3 = scmp.lt.s32.totalorder %s3528_s24, %s3528_s24 }
  0x28   :  { %p3535_p4 = por %p3534_p3, %p3533_p2 }
  0x2a   :  { %p3536_p5 = pnand %p3535_p4, %p3529_p1 }
  0x2c   :  { %3539 = shalt.err (!%p3536_p5)
}
  0x2d   :  { %68 = dma.hbm_to_vmem [thread:$0]  %s3856_s7, 8192, %s63_s22, [#allocation5], %s3571_s30, %s3571_s30, %s3572_s16  }
  0x2e   :  { %s3548_s1 = scalar_lea.vmem %s95_s10, 4096  ;;  %p3553_p7 = scmp.lt.s32.totalorder %s95_s10, %s95_s10 }
  0x2f   :  { %p3549_p6 = scmp.ne.s32.totalorder %s95_s10, %s3548_s1  ;;  %p3554_p8 = scmp.lt.s32.totalorder %s3548_s1, %s3548_s1 }
  0x31   :  { %p3555_p9 = por %p3554_p8, %p3553_p7 }
  0x33   :  { %p3556_p10 = pnand %p3555_p9, %p3549_p6 }
  0x35   :  { %3559 = shalt.err (!%p3556_p10)
}
  0x36   :  { %100 = dma.hbm_to_vmem [thread:$0]  %s3862_s13, 4096, %s95_s10, [#allocation8], %s3571_s30, %s3571_s30, %s3572_s16  }
  0x37   :  { %3560 = dma.done.wait [#allocation3], 4096  }
  0x38   :  { %3561 = vsyncadd [#allocation3], 4294963200 }
  0x39   :  { %3562 = dma.done.wait [#allocation5], 40960  }
  0x3a   :  { %3563 = vsyncadd [#allocation5], 4294926336 }
  0x3b   :  { %3564 = dma.done.wait [#allocation8], 8192  }
  0x3c   :  { %3565 = vsyncadd [#allocation8], 4294959104  ;;  %v3575_v0 = vmov 0   ;;  %v3196_v1 = vld [vmem:[#allocation2 + $0xe4] ss:$16 sps:$4 sm:$0xff]   ;;  %v632_v35 = vld [vmem:[#allocation4 + $0x1c8] sm:$0xff] }
  0x3d   :  { %345 = vmatprep.mubr.bf16.mxu0 %v3575_v0  ;;  %386 = vmatprep.mubr.bf16.mxu1 %v3575_v0  ;;  %v3198_v2 = vld [vmem:[#allocation2 + $0xec] ss:$16 sps:$4 sm:$0xff]   ;;  %v3200_v3 = vld [vmem:[#allocation2 + $0xe0] ss:$16 sps:$4 sm:$0xff]   ;;  %v3201_v4 = vld [vmem:[#allocation2 + $0xe8] ss:$16 sps:$4 sm:$0xff]  }
  0x3e   :  { %313 = vmatprep.subr.bf16.mxu0 %v3196_v1  ;;  %354 = vmatprep.subr.bf16.mxu1 %v3198_v2  ;;  %v3202_v5 = vld [vmem:[#allocation2 + $0xc4] ss:$16 sps:$4 sm:$0xff]   ;;  %v3204_v6 = vld [vmem:[#allocation2 + $0xcc] ss:$16 sps:$4 sm:$0xff]   ;;  %v3206_v7 = vld [vmem:[#allocation2 + $0xc0] ss:$16 sps:$4 sm:$0xff]  }
  0x3f   :  { %314 = vmatpush1.bf16.msra.mxu0 %v3200_v3  ;;  %355 = vmatpush1.bf16.msra.mxu1 %v3201_v4  ;;  %v3207_v8 = vld [vmem:[#allocation2 + $0xc8] ss:$16 sps:$4 sm:$0xff]   ;;  %v3208_v9 = vld [vmem:[#allocation2 + $0xa4] ss:$16 sps:$4 sm:$0xff]   ;;  %v3210_v10 = vld [vmem:[#allocation2 + $0xac] ss:$16 sps:$4 sm:$0xff]  }
  0x40   :  { %315 = vmatprep.subr.bf16.mxu0 %v3202_v5  ;;  %356 = vmatprep.subr.bf16.mxu1 %v3204_v6  ;;  %v3212_v11 = vld [vmem:[#allocation2 + $0xa0] ss:$16 sps:$4 sm:$0xff]   ;;  %v3213_v12 = vld [vmem:[#allocation2 + $0xa8] ss:$16 sps:$4 sm:$0xff]   ;;  %v3214_v13 = vld [vmem:[#allocation2 + $0x84] ss:$16 sps:$4 sm:$0xff]  }
  0x41   :  { %v3216_v14 = vld [vmem:[#allocation2 + $0x8c] ss:$16 sps:$4 sm:$0xff]   ;;  %v3218_v15 = vld [vmem:[#allocation2 + $0x80] ss:$16 sps:$4 sm:$0xff]   ;;  %v3219_v16 = vld [vmem:[#allocation2 + $0x88] ss:$16 sps:$4 sm:$0xff]  }
  0x42   :  { %v3220_v17 = vld [vmem:[#allocation2 + $0x64] ss:$16 sps:$4 sm:$0xff]   ;;  %v3222_v18 = vld [vmem:[#allocation2 + $0x6c] ss:$16 sps:$4 sm:$0xff]   ;;  %v3224_v19 = vld [vmem:[#allocation2 + $0x60] ss:$16 sps:$4 sm:$0xff]  }
  0x43   :  { %316 = vmatpush1.bf16.msra.mxu0 %v3206_v7  ;;  %357 = vmatpush1.bf16.msra.mxu1 %v3207_v8  ;;  %v3225_v20 = vld [vmem:[#allocation2 + $0x68] ss:$16 sps:$4 sm:$0xff]   ;;  %v3226_v21 = vld [vmem:[#allocation2 + $0x44] ss:$16 sps:$4 sm:$0xff]   ;;  %v3228_v22 = vld [vmem:[#allocation2 + $0x4c] ss:$16 sps:$4 sm:$0xff]  }
  0x44   :  { %317 = vmatprep.subr.bf16.mxu0 %v3208_v9  ;;  %358 = vmatprep.subr.bf16.mxu1 %v3210_v10  ;;  %v3230_v23 = vld [vmem:[#allocation2 + $0x40] ss:$16 sps:$4 sm:$0xff]   ;;  %v3231_v24 = vld [vmem:[#allocation2 + $0x48] ss:$16 sps:$4 sm:$0xff]   ;;  %v3232_v25 = vld [vmem:[#allocation2 + $0x24] ss:$16 sps:$4 sm:$0xff]  }
  0x45   :  { %v3234_v26 = vld [vmem:[#allocation2 + $0x2c] ss:$16 sps:$4 sm:$0xff]   ;;  %v3236_v27 = vld [vmem:[#allocation2 + $0x20] ss:$16 sps:$4 sm:$0xff]   ;;  %v3237_v28 = vld [vmem:[#allocation2 + $0x28] ss:$16 sps:$4 sm:$0xff]  }
  0x46   :  { %v3238_v29 = vld [vmem:[#allocation2 + $0x4] ss:$16 sps:$4 sm:$0xff]   ;;  %v3240_v30 = vld [vmem:[#allocation2 + $0xc] ss:$16 sps:$4 sm:$0xff]   ;;  %v3242_v31 = vld [vmem:[#allocation2] ss:$16 sps:$4 sm:$0xff]  }
  0x47   :  { %318 = vmatpush1.bf16.msra.mxu0 %v3212_v11  ;;  %359 = vmatpush1.bf16.msra.mxu1 %v3213_v12  ;;  %v3243_v32 = vld [vmem:[#allocation2 + $0x8] ss:$16 sps:$4 sm:$0xff]   ;;  %v119_v33 = vld [vmem:[%s3849_s0] sm:$0x3]  ;;  %vm395_vm0 = vcmask 1041408   ;;  %vm1544_vm1 = vcmask 1043456  }
  0x48   :  { %319 = vmatprep.subr.bf16.mxu0 %v3214_v13  ;;  %360 = vmatprep.subr.bf16.mxu1 %v3216_v14  ;;  %v120_v34 = vpack.c.bf16 %v119_v33, %v119_v33  ;;  %v634_v36 = vld [vmem:[#allocation4 + $0x1e8] sm:$0xff]  ;;  %vm2144_vm2 = vcmask 1045504  }
  0x49   :  { %v696_v37 = vld [vmem:[#allocation4 + $0x5c8] sm:$0xff]  ;;  %v2957_v38 = vcombine.high %v632_v35, %v634_v36  ;;  %v2956_v40 = vcombine.low %v632_v35, %v634_v36 }
  0x4a   :  { %v698_v39 = vld [vmem:[#allocation4 + $0x5e8] sm:$0xff] }
  0x4b   :  { %320 = vmatpush1.bf16.msra.mxu0 %v3218_v15  ;;  %361 = vmatpush1.bf16.msra.mxu1 %v3219_v16  ;;  %v3020_v41 = vcombine.low %v696_v37, %v698_v39  ;;  %v3021_v42 = vcombine.high %v696_v37, %v698_v39  ;;  %v628_v43 = vld [vmem:[#allocation4 + $0x188] sm:$0xff] }
  0x4c   :  { %321 = vmatprep.subr.bf16.mxu0 %v3220_v17  ;;  %362 = vmatprep.subr.bf16.mxu1 %v3222_v18  ;;  %v630_v44 = vld [vmem:[#allocation4 + $0x1a8] sm:$0xff] }
  0x4d   :  { %v692_v45 = vld [vmem:[#allocation4 + $0x588] sm:$0xff]  ;;  %v2953_v46 = vcombine.high %v628_v43, %v630_v44  ;;  %v2952_v48 = vcombine.low %v628_v43, %v630_v44 }
  0x4e   :  { %v694_v47 = vld [vmem:[#allocation4 + $0x5a8] sm:$0xff] }
  0x4f   :  { %322 = vmatpush1.bf16.msra.mxu0 %v3224_v19  ;;  %363 = vmatpush1.bf16.msra.mxu1 %v3225_v20  ;;  %v3016_v49 = vcombine.low %v692_v45, %v694_v47  ;;  %v3017_v50 = vcombine.high %v692_v45, %v694_v47  ;;  %v624_v51 = vld [vmem:[#allocation4 + $0x148] sm:$0xff] }
  0x50   :  { %323 = vmatprep.subr.bf16.mxu0 %v3226_v21  ;;  %364 = vmatprep.subr.bf16.mxu1 %v3228_v22  ;;  %v626_v52 = vld [vmem:[#allocation4 + $0x168] sm:$0xff] }
  0x51   :  { %v688_v53 = vld [vmem:[#allocation4 + $0x548] sm:$0xff]  ;;  %v2949_v54 = vcombine.high %v624_v51, %v626_v52  ;;  %v2948_v56 = vcombine.low %v624_v51, %v626_v52 }
  0x52   :  { %v690_v55 = vld [vmem:[#allocation4 + $0x568] sm:$0xff] }
  0x53   :  { %324 = vmatpush1.bf16.msra.mxu0 %v3230_v23  ;;  %365 = vmatpush1.bf16.msra.mxu1 %v3231_v24  ;;  %v3012_v57 = vcombine.low %v688_v53, %v690_v55  ;;  %v3013_v58 = vcombine.high %v688_v53, %v690_v55  ;;  %v620_v59 = vld [vmem:[#allocation4 + $0x108] sm:$0xff] }
  0x54   :  { %325 = vmatprep.subr.bf16.mxu0 %v3232_v25  ;;  %366 = vmatprep.subr.bf16.mxu1 %v3234_v26  ;;  %v622_v60 = vld [vmem:[#allocation4 + $0x128] sm:$0xff] }
  0x55   :  { %v684_v61 = vld [vmem:[#allocation4 + $0x508] sm:$0xff]  ;;  %v2945_v62 = vcombine.high %v620_v59, %v622_v60  ;;  %v2944_v1 = vcombine.low %v620_v59, %v622_v60 }
  0x56   :  { %v686_v63 = vld [vmem:[#allocation4 + $0x528] sm:$0xff] }
  0x57   :  { %326 = vmatpush1.bf16.msra.mxu0 %v3236_v27  ;;  %367 = vmatpush1.bf16.msra.mxu1 %v3237_v28  ;;  %v3008_v2 = vcombine.low %v684_v61, %v686_v63  ;;  %v3009_v3 = vcombine.high %v684_v61, %v686_v63  ;;  %v616_v4 = vld [vmem:[#allocation4 + $0xc8] sm:$0xff] }
  0x58   :  { %327 = vmatprep.subr.bf16.mxu0 %v3238_v29  ;;  %368 = vmatprep.subr.bf16.mxu1 %v3240_v30  ;;  %v618_v5 = vld [vmem:[#allocation4 + $0xe8] sm:$0xff] }
  0x59   :  { %v680_v6 = vld [vmem:[#allocation4 + $0x4c8] sm:$0xff]  ;;  %v2941_v7 = vcombine.high %v616_v4, %v618_v5  ;;  %v2940_v9 = vcombine.low %v616_v4, %v618_v5 }
  0x5a   :  { %v682_v8 = vld [vmem:[#allocation4 + $0x4e8] sm:$0xff] }
  0x5b   :  { %328 = vmatpush1.bf16.msra.mxu0 %v3242_v31  ;;  %369 = vmatpush1.bf16.msra.mxu1 %v3243_v32  ;;  %v3004_v10 = vcombine.low %v680_v6, %v682_v8  ;;  %v3005_v11 = vcombine.high %v680_v6, %v682_v8  ;;  %v612_v12 = vld [vmem:[#allocation4 + $0x88] sm:$0xff] }
  0x5c   :  { %1372 = vmatprep.subr.bf16.mxu0 %v2957_v38  ;;  %1413 = vmatprep.subr.bf16.mxu1 %v3021_v42  ;;  %v614_v13 = vld [vmem:[#allocation4 + $0xa8] sm:$0xff] }
  0x5d   :  { %v676_v14 = vld [vmem:[#allocation4 + $0x488] sm:$0xff]  ;;  %v2937_v15 = vcombine.high %v612_v12, %v614_v13  ;;  %v2936_v17 = vcombine.low %v612_v12, %v614_v13 }
  0x5e   :  { %346 = vmatmul.mubr.bf16.vlgmr.msra.gmra.mxu0 %v120_v34  ;;  %387 = vmatmul.mubr.bf16.vlgmr.msra.gmra.mxu1 %v120_v34  ;;  %v678_v16 = vld [vmem:[#allocation4 + $0x4a8] sm:$0xff] }
  0x5f   :  { %1373 = vmatpush1.bf16.msra.mxu0 %v2956_v40  ;;  %1414 = vmatpush1.bf16.msra.mxu1 %v3020_v41  ;;  %v3000_v18 = vcombine.low %v676_v14, %v678_v16  ;;  %v3001_v19 = vcombine.high %v676_v14, %v678_v16  ;;  %v608_v20 = vld [vmem:[#allocation4 + $0x48] sm:$0xff] }
  0x60   :  { %1374 = vmatprep.subr.bf16.mxu0 %v2953_v46  ;;  %1415 = vmatprep.subr.bf16.mxu1 %v3017_v50  ;;  %v610_v21 = vld [vmem:[#allocation4 + $0x68] sm:$0xff] }
  0x61   :  { %v672_v22 = vld [vmem:[#allocation4 + $0x448] sm:$0xff]  ;;  %v2933_v23 = vcombine.high %v608_v20, %v610_v21  ;;  %v2932_v25 = vcombine.low %v608_v20, %v610_v21 }
  0x62   :  { %v674_v24 = vld [vmem:[#allocation4 + $0x468] sm:$0xff] }
  0x63   :  { %1375 = vmatpush1.bf16.msra.mxu0 %v2952_v48  ;;  %1416 = vmatpush1.bf16.msra.mxu1 %v3016_v49  ;;  %v2996_v26 = vcombine.low %v672_v22, %v674_v24  ;;  %v2997_v27 = vcombine.high %v672_v22, %v674_v24  ;;  %v604_v28 = vld [vmem:[#allocation4 + $0x8] sm:$0xff] }
  0x64   :  { %1376 = vmatprep.subr.bf16.mxu0 %v2949_v54  ;;  %1417 = vmatprep.subr.bf16.mxu1 %v3013_v58  ;;  %v606_v29 = vld [vmem:[#allocation4 + $0x28] sm:$0xff] }
  0x65   :  { %v668_v30 = vld [vmem:[#allocation4 + $0x408] sm:$0xff]  ;;  %v2929_v31 = vcombine.high %v604_v28, %v606_v29  ;;  %v2928_v33 = vcombine.low %v604_v28, %v606_v29 }
  0x66   :  { %v670_v32 = vld [vmem:[#allocation4 + $0x428] sm:$0xff] }
  0x67   :  { %1377 = vmatpush1.bf16.msra.mxu0 %v2948_v56  ;;  %1418 = vmatpush1.bf16.msra.mxu1 %v3012_v57  ;;  %v2992_v34 = vcombine.low %v668_v30, %v670_v32  ;;  %v2993_v35 = vcombine.high %v668_v30, %v670_v32  ;;  %v664_v36 = vld [vmem:[#allocation4 + $0x3c8] sm:$0xff] }
  0x68   :  { %1378 = vmatprep.subr.bf16.mxu0 %v2945_v62  ;;  %1419 = vmatprep.subr.bf16.mxu1 %v3009_v3  ;;  %v666_v37 = vld [vmem:[#allocation4 + $0x3e8] sm:$0xff] }
  0x69   :  { %v728_v38 = vld [vmem:[#allocation4 + $0x7c8] sm:$0xff]  ;;  %v2989_v39 = vcombine.high %v664_v36, %v666_v37  ;;  %v2988_v41 = vcombine.low %v664_v36, %v666_v37  ;;  %v3689_v37 = vld [vmem:[#allocation4 + $0x1d0] sm:$0xff] }
  0x6a   :  { %v730_v40 = vld [vmem:[#allocation4 + $0x7e8] sm:$0xff] }
  0x6b   :  { %1379 = vmatpush1.bf16.msra.mxu0 %v2944_v1  ;;  %1420 = vmatpush1.bf16.msra.mxu1 %v3008_v2  ;;  %v3052_v42 = vcombine.low %v728_v38, %v730_v40  ;;  %v3053_v43 = vcombine.high %v728_v38, %v730_v40  ;;  %v660_v44 = vld [vmem:[#allocation4 + $0x388] sm:$0xff]  ;;  %v3691_v38 = vld [vmem:[#allocation4 + $0x1f0] sm:$0xff] }
  0x6c   :  { %1380 = vmatprep.subr.bf16.mxu0 %v2941_v7  ;;  %1421 = vmatprep.subr.bf16.mxu1 %v3005_v11  ;;  %v662_v45 = vld [vmem:[#allocation4 + $0x3a8] sm:$0xff]  ;;  %v2959_v40 = vcombine.high %v3689_v37, %v3691_v38 }
  0x6d   :  { %v724_v46 = vld [vmem:[#allocation4 + $0x788] sm:$0xff]  ;;  %v2985_v47 = vcombine.high %v660_v44, %v662_v45  ;;  %v2984_v49 = vcombine.low %v660_v44, %v662_v45 }
  0x6e   :  { %v726_v48 = vld [vmem:[#allocation4 + $0x7a8] sm:$0xff] }
  0x6f   :  { %1381 = vmatpush1.bf16.msra.mxu0 %v2940_v9  ;;  %1422 = vmatpush1.bf16.msra.mxu1 %v3004_v10  ;;  %v3048_v50 = vcombine.low %v724_v46, %v726_v48  ;;  %v3049_v51 = vcombine.high %v724_v46, %v726_v48  ;;  %v656_v52 = vld [vmem:[#allocation4 + $0x348] sm:$0xff] }
  0x70   :  { %1382 = vmatprep.subr.bf16.mxu0 %v2937_v15  ;;  %1423 = vmatprep.subr.bf16.mxu1 %v3001_v19  ;;  %v658_v53 = vld [vmem:[#allocation4 + $0x368] sm:$0xff] }
  0x71   :  { %v720_v54 = vld [vmem:[#allocation4 + $0x748] sm:$0xff]  ;;  %v2981_v55 = vcombine.high %v656_v52, %v658_v53  ;;  %v2980_v57 = vcombine.low %v656_v52, %v658_v53 }
  0x72   :  { %v722_v56 = vld [vmem:[#allocation4 + $0x768] sm:$0xff] }
  0x73   :  { %1383 = vmatpush1.bf16.msra.mxu0 %v2936_v17  ;;  %1424 = vmatpush1.bf16.msra.mxu1 %v3000_v18  ;;  %v3044_v58 = vcombine.low %v720_v54, %v722_v56  ;;  %v3045_v59 = vcombine.high %v720_v54, %v722_v56  ;;  %v652_v60 = vld [vmem:[#allocation4 + $0x308] sm:$0xff] }
  0x74   :  { %1384 = vmatprep.subr.bf16.mxu0 %v2933_v23  ;;  %1425 = vmatprep.subr.bf16.mxu1 %v2997_v27  ;;  %v654_v61 = vld [vmem:[#allocation4 + $0x328] sm:$0xff] }
  0x75   :  { %v716_v62 = vld [vmem:[#allocation4 + $0x708] sm:$0xff]  ;;  %v2977_v63 = vcombine.high %v652_v60, %v654_v61  ;;  %v2976_v2 = vcombine.low %v652_v60, %v654_v61 }
  0x76   :  { %v718_v1 = vld [vmem:[#allocation4 + $0x728] sm:$0xff] }
  0x77   :  { %1385 = vmatpush1.bf16.msra.mxu0 %v2932_v25  ;;  %1426 = vmatpush1.bf16.msra.mxu1 %v2996_v26  ;;  %v3040_v3 = vcombine.low %v716_v62, %v718_v1  ;;  %v3041_v4 = vcombine.high %v716_v62, %v718_v1  ;;  %v648_v5 = vld [vmem:[#allocation4 + $0x2c8] sm:$0xff] }
  0x78   :  { %1386 = vmatprep.subr.bf16.mxu0 %v2929_v31  ;;  %1427 = vmatprep.subr.bf16.mxu1 %v2993_v35  ;;  %v650_v6 = vld [vmem:[#allocation4 + $0x2e8] sm:$0xff] }
  0x79   :  { %v712_v7 = vld [vmem:[#allocation4 + $0x6c8] sm:$0xff]  ;;  %v2973_v8 = vcombine.high %v648_v5, %v650_v6  ;;  %v2972_v10 = vcombine.low %v648_v5, %v650_v6 }
  0x7a   :  { %v714_v9 = vld [vmem:[#allocation4 + $0x6e8] sm:$0xff] }
  0x7b   :  { %1387 = vmatpush1.bf16.msra.mxu0 %v2928_v33  ;;  %1428 = vmatpush1.bf16.msra.mxu1 %v2992_v34  ;;  %v3036_v11 = vcombine.low %v712_v7, %v714_v9  ;;  %v3037_v12 = vcombine.high %v712_v7, %v714_v9  ;;  %v644_v13 = vld [vmem:[#allocation4 + $0x288] sm:$0xff] }
  0x7c   :  { %1388 = vmatprep.subr.bf16.mxu0 %v2989_v39  ;;  %1429 = vmatprep.subr.bf16.mxu1 %v3053_v43  ;;  %v646_v14 = vld [vmem:[#allocation4 + $0x2a8] sm:$0xff]  ;;  %v3693_v39 = vld [vmem:[#allocation4 + $0x5d0] sm:$0xff] }
  0x7d   :  { %v708_v15 = vld [vmem:[#allocation4 + $0x688] sm:$0xff]  ;;  %v2968_v16 = vcombine.low %v644_v13, %v646_v14  ;;  %v2969_v17 = vcombine.high %v644_v13, %v646_v14 }
  0x7e   :  { %v710_v18 = vld [vmem:[#allocation4 + $0x6a8] sm:$0xff] }
  0x7f   :  { %1389 = vmatpush2.bf16.msra.mxu0 %v2988_v41  ;;  %1430 = vmatpush2.bf16.msra.mxu1 %v3052_v42  ;;  %v640_v19 = vld [vmem:[#allocation4 + $0x248] sm:$0xff]  ;;  %v3032_v21 = vcombine.low %v708_v15, %v710_v18  ;;  %v3033_v22 = vcombine.high %v708_v15, %v710_v18  ;;  %v3697_v41 = vld [vmem:[#allocation4 + $0x5f0] sm:$0xff]  ;;  %v2958_v42 = vcombine.low %v3689_v37, %v3691_v38 }
  0x80   :  { %1390 = vmatprep.subr.bf16.mxu0 %v2985_v47  ;;  %1431 = vmatprep.subr.bf16.mxu1 %v3049_v51  ;;  %v642_v20 = vld [vmem:[#allocation4 + $0x268] sm:$0xff]  ;;  %v3022_v43 = vcombine.low %v3693_v39, %v3697_v41  ;;  %v3023_v44 = vcombine.high %v3693_v39, %v3697_v41 }
  0x81   :  { %v2965_v23 = vcombine.high %v640_v19, %v642_v20  ;;  %v704_v24 = vld [vmem:[#allocation4 + $0x648] sm:$0xff]  ;;  %v2964_v31 = vcombine.low %v640_v19, %v642_v20 }
  0x82   :  { %v706_v25 = vld [vmem:[#allocation4 + $0x668] sm:$0xff] }
  0x83   :  { %1391 = vmatpush2.bf16.msra.mxu0 %v2984_v49  ;;  %1432 = vmatpush2.bf16.msra.mxu1 %v3048_v50  ;;  %v3029_v26 = vcombine.high %v704_v24, %v706_v25  ;;  %v636_v27 = vld [vmem:[#allocation4 + $0x208] sm:$0xff]  ;;  %v3028_v32 = vcombine.low %v704_v24, %v706_v25 }
  0x84   :  { %1392 = vmatprep.subr.bf16.mxu0 %v2981_v55  ;;  %1433 = vmatprep.subr.bf16.mxu1 %v3045_v59  ;;  %v638_v28 = vld [vmem:[#allocation4 + $0x228] sm:$0xff] }
  0x85   :  { %v700_v29 = vld [vmem:[#allocation4 + $0x608] sm:$0xff]  ;;  %v2961_v33 = vcombine.high %v636_v27, %v638_v28  ;;  %v2960_v35 = vcombine.low %v636_v27, %v638_v28 }
  0x86   :  { %v702_v30 = vld [vmem:[#allocation4 + $0x628] sm:$0xff] }
  0x87   :  { %1393 = vmatpush2.bf16.msra.mxu0 %v2980_v57  ;;  %1434 = vmatpush2.bf16.msra.mxu1 %v3044_v58  ;;  %v3025_v34 = vcombine.high %v700_v29, %v702_v30  ;;  %v3024_v36 = vcombine.low %v700_v29, %v702_v30 }
  0x88   :  { %1394 = vmatprep.subr.bf16.mxu0 %v2977_v63  ;;  %1435 = vmatprep.subr.bf16.mxu1 %v3041_v4 }
  0x8b   :  { %1395 = vmatpush2.bf16.msra.mxu0 %v2976_v2  ;;  %1436 = vmatpush2.bf16.msra.mxu1 %v3040_v3 }
  0x8c   :  { %1396 = vmatprep.subr.bf16.mxu0 %v2973_v8  ;;  %1437 = vmatprep.subr.bf16.mxu1 %v3037_v12 }
  0x8f   :  { %1397 = vmatpush2.bf16.msra.mxu0 %v2972_v10  ;;  %1438 = vmatpush2.bf16.msra.mxu1 %v3036_v11 }
  0x90   :  { %1398 = vmatprep.subr.bf16.mxu0 %v2969_v17  ;;  %1439 = vmatprep.subr.bf16.mxu1 %v3033_v22 }
  0x93   :  { %1399 = vmatpush2.bf16.msra.mxu0 %v2968_v16  ;;  %1440 = vmatpush2.bf16.msra.mxu1 %v3032_v21 }
  0x94   :  { %1400 = vmatprep.subr.bf16.mxu0 %v2965_v23  ;;  %1441 = vmatprep.subr.bf16.mxu1 %v3029_v26 }
  0x97   :  { %1401 = vmatpush2.bf16.msra.mxu0 %v2964_v31  ;;  %1442 = vmatpush2.bf16.msra.mxu1 %v3028_v32 }
  0x98   :  { %1402 = vmatprep.subr.bf16.mxu0 %v2961_v33  ;;  %1443 = vmatprep.subr.bf16.mxu1 %v3025_v34 }
  0x9b   :  { %1403 = vmatpush2.bf16.msra.mxu0 %v2960_v35  ;;  %1444 = vmatpush2.bf16.msra.mxu1 %v3024_v36 }
  0x9c   :  { %1454 = vmatprep.subr.bf16.mxu0 %v2959_v40  ;;  %1495 = vmatprep.subr.bf16.mxu1 %v3023_v44 }
 0x11e   :  { %v3705_v45 = vpop.f32.mrf.mxu0  ;;  %v3707_v46 = vpop.f32.mrf.mxu1 }
 0x11f   :  { %v396_v47 = vsel %vm395_vm0, %v3705_v45, 0.0  ;;  %v428_v48 = vmul.f32 %v3705_v45, %v3705_v45  ;;  %v410_v49 = vsel %vm395_vm0, %v3707_v46, 0.0  ;;  %v430_v50 = vmul.f32 %v3707_v46, %v3707_v46 }
 0x120   :  { %v397_v51 = vrot.slane %v396_v47, 4  ;;  %v411_v52 = vrot.slane %v410_v49, 4  ;;  %v3717_v53 = vpop.f32.mrf.mxu0  ;;  %v3719_v54 = vpop.f32.mrf.mxu1 }
 0x121   :  { %v432_v55 = vsel %vm395_vm0, %v428_v48, 0.0  ;;  %v446_v56 = vsel %vm395_vm0, %v430_v50, 0.0  ;;  %v403_v57 = vsel %vm395_vm0, %v3717_v53, 0.0  ;;  %v429_v58 = vmul.f32 %v3717_v53, %v3717_v53 }
 0x122   :  { %v398_v59 = vadd.f32 %v397_v51, %v396_v47  ;;  %v433_v60 = vrot.slane %v432_v55, 4  ;;  %v412_v61 = vadd.f32 %v411_v52, %v410_v49  ;;  %v447_v62 = vrot.slane %v446_v56, 4  ;;  %v351_v63 = vpop.f32.mrf.mxu0  ;;  %v392_v1 = vpop.f32.mrf.mxu1 }
 0x123   :  { %v404_v2 = vrot.slane %v403_v57, 4  ;;  %v439_v3 = vsel %vm395_vm0, %v429_v58, 0.0  ;;  %v417_v4 = vsel %vm395_vm0, %v3719_v54, 0.0  ;;  %v431_v5 = vmul.f32 %v3719_v54, %v3719_v54 }
 0x124   :  { %v399_v6 = vrot.slane %v398_v59, 2  ;;  %v434_v7 = vadd.f32 %v433_v60, %v432_v55  ;;  %v413_v8 = vrot.slane %v412_v61, 2  ;;  %v448_v9 = vadd.f32 %v447_v62, %v446_v56  ;;  %v352_v10 = vpop.f32.mrf.mxu0  ;;  %v393_v11 = vpop.f32.mrf.mxu1 }
 0x125   :  { %v405_v12 = vadd.f32 %v404_v2, %v403_v57  ;;  %v440_v13 = vrot.slane %v439_v3, 4  ;;  %v418_v14 = vrot.slane %v417_v4, 4  ;;  %v453_v15 = vsel %vm395_vm0, %v431_v5, 0.0 }
 0x126   :  { %v400_v16 = vadd.f32 %v399_v6, %v398_v59  ;;  %v435_v17 = vrot.slane %v434_v7, 2  ;;  %v414_v18 = vadd.f32 %v413_v8, %v412_v61  ;;  %v449_v19 = vrot.slane %v448_v9, 2 }
 0x127   :  { %v406_v20 = vrot.slane %v405_v12, 2  ;;  %v441_v21 = vadd.f32 %v440_v13, %v439_v3  ;;  %v419_v22 = vadd.f32 %v418_v14, %v417_v4  ;;  %v454_v23 = vrot.slane %v453_v15, 4 }
 0x128   :  { %v401_v24 = vrot.slane %v400_v16, 1  ;;  %v436_v25 = vadd.f32 %v435_v17, %v434_v7  ;;  %v415_v26 = vrot.slane %v414_v18, 1  ;;  %v450_v27 = vadd.f32 %v449_v19, %v448_v9 }
 0x129   :  { %v407_v28 = vadd.f32 %v406_v20, %v405_v12  ;;  %v442_v29 = vrot.slane %v441_v21, 2  ;;  %v420_v30 = vrot.slane %v419_v22, 2  ;;  %v455_v31 = vadd.f32 %v454_v23, %v453_v15 }
 0x12a   :  { %v402_v32 = vadd.f32 %v401_v24, %v400_v16  ;;  %v437_v33 = vrot.slane %v436_v25, 1  ;;  %v416_v34 = vadd.f32 %v415_v26, %v414_v18  ;;  %v451_v35 = vrot.slane %v450_v27, 1 }
 0x12b   :  { %v408_v36 = vrot.slane %v407_v28, 1  ;;  %v443_v40 = vadd.f32 %v442_v29, %v441_v21  ;;  %v421_v44 = vadd.f32 %v420_v30, %v419_v22  ;;  %v456_v47 = vrot.slane %v455_v31, 2 }
 0x12c   :  { %v424_v48 = vmul.f32 0.5, %v402_v32  ;;  %v438_v49 = vadd.f32 %v437_v33, %v436_v25  ;;  %v426_v50 = vmul.f32 0.5, %v416_v34  ;;  %v452_v51 = vadd.f32 %v451_v35, %v450_v27  ;;  %v472_v32 = vld [vmem:[%s3851_s2] sm:$0xf] }
 0x12d   :  { %v409_v52 = vadd.f32 %v408_v36, %v407_v28  ;;  %v444_v55 = vrot.slane %v443_v40, 1  ;;  %v422_v56 = vrot.slane %v421_v44, 1  ;;  %v457_v57 = vadd.f32 %v456_v47, %v455_v31 }
 0x12e   :  { %v460_v58 = vmul.f32 0.5, %v438_v49  ;;  %v464_v59 = vmul.f32 %v424_v48, %v424_v48  ;;  %v462_v60 = vmul.f32 0.5, %v452_v51  ;;  %v466_v61 = vmul.f32 %v426_v50, %v426_v50 }
 0x12f   :  { %v425_v62 = vmul.f32 0.5, %v409_v52  ;;  %v445_v63 = vadd.f32 %v444_v55, %v443_v40  ;;  %v423_v1 = vadd.f32 %v422_v56, %v421_v44  ;;  %v458_v2 = vrot.slane %v457_v57, 1 }
 0x130   :  { %v468_v3 = vsub.f32 %v460_v58, %v464_v59  ;;  %v470_v4 = vsub.f32 %v462_v60, %v466_v61  ;;  %v3576_v17 = vmov 1966171168   ;;  %v490_v19 = vlaneseq }
 0x131   :  { %v461_v5 = vmul.f32 0.5, %v445_v63  ;;  %v465_v6 = vmul.f32 %v425_v62, %v425_v62  ;;  %v427_v7 = vmul.f32 0.5, %v423_v1  ;;  %v459_v8 = vadd.f32 %v458_v2, %v457_v57  ;;  %v511_v2 = vld [vmem:[%s3852_s3] sm:$0xf] }
 0x132   :  { %v473_v9 = vadd.f32 1e-05, %v468_v3  ;;  %v475_v13 = vadd.f32 1e-05, %v470_v4  ;;  %v488_v18 = vunpack.c.l.s4 %v3576_v17  ;;  %v491_v21 = vshrl.u32 %v490_v19, 7  ;;  %v629_v17 = vld [vmem:[#allocation4 + $0x190] sm:$0xff] }
 0x133   :  { %v469_v10 = vsub.f32 %v461_v5, %v465_v6  ;;  %v463_v11 = vmul.f32 0.5, %v459_v8  ;;  %v467_v12 = vmul.f32 %v427_v7, %v427_v7 }
 0x134   :  { %3436 = vrsqrt.f32 %v473_v9  ;;  %v489_v20 = vunpack.c.0.s8 %v488_v18  ;;  %v3740_v33 = vsub.s32 0, %v491_v21  ;;  %v523_v35 = vsub.s32 2, %v491_v21  ;;  %v693_v18 = vld [vmem:[#allocation4 + $0x590] sm:$0xff] }
 0x135   :  { %v474_v14 = vadd.f32 1e-05, %v469_v10  ;;  %v471_v15 = vsub.f32 %v463_v11, %v467_v12  ;;  %v527_v36 = vsub.s32 3, %v491_v21  ;;  %v3743_v40 = vsub.s32 1, %v491_v21 }
 0x136   :  { %v3733_v23 = vsub.s32 %v489_v20, %v491_v21 }
 0x137   :  { %3438 = vrsqrt.f32 %v474_v14  ;;  %v476_v16 = vadd.f32 1e-05, %v471_v15 }
 0x138   :  { %3440 = vrsqrt.f32 %v475_v13 }
 0x139   :  { %3442 = vrsqrt.f32 %v476_v16 }
 0x141   :  { %v3437_v22 = vpop.eup %3436 }
 0x144   :  { %v3439_v24 = vpop.eup %3438 }
 0x145   :  { %v3441_v25 = vpop.eup %3440  ;;  %v485_v26 = vcombine.low %v3437_v22, %v3439_v24  ;;  %v625_v22 = vld [vmem:[#allocation4 + $0x150] sm:$0xff] }
 0x146   :  { %v3443_v27 = vpop.eup %3442 }
 0x147   :  { %v486_v28 = vcombine.low %v3441_v25, %v3443_v27  ;;  %v493_v29 = vrot.slane %v485_v26, %v3733_v23  ;;  %v627_v26 = vld [vmem:[#allocation4 + $0x170] sm:$0xff] }
 0x148   :  { %v689_v27 = vld [vmem:[#allocation4 + $0x550] sm:$0xff]  ;;  %v2950_v37 = vcombine.low %v625_v22, %v627_v26 }
 0x149   :  { %v500_v30 = vrot.slane %v486_v28, %v3733_v23  ;;  %v691_v28 = vld [vmem:[#allocation4 + $0x570] sm:$0xff] }
 0x14a   :  { %v3014_v38 = vcombine.low %v689_v27, %v691_v28 }
 0x14b   :  { %v501_v31 = vcombine.low %v493_v29, %v500_v30 }
 0x14d   :  { %v508_v34 = vrot.slane %v501_v31, %v3733_v23  ;;  %v2951_v31 = vcombine.high %v625_v22, %v627_v26  ;;  %v661_v22 = vld [vmem:[#allocation4 + $0x390] sm:$0xff] }
 0x14e   :  { %v727_v26 = vld [vmem:[#allocation4 + $0x7b0] sm:$0xff] }
 0x14f   :  { %v510_v44 = vmul.f32 %v508_v34, %v472_v32  ;;  %v3015_v32 = vcombine.high %v689_v27, %v691_v28  ;;  %v621_v34 = vld [vmem:[#allocation4 + $0x110] sm:$0xff] }
 0x151   :  { %v524_v47 = vrot.slane %v510_v44, %v523_v35  ;;  %v528_v49 = vrot.slane %v510_v44, %v527_v36  ;;  %v516_v51 = vrot.slane %v510_v44, %v3740_v33  ;;  %v520_v52 = vrot.slane %v510_v44, %v3743_v40  ;;  %v687_v44 = vld [vmem:[#allocation4 + $0x530] sm:$0xff] }
 0x153   :  { %v535_v55 = vmul.f32 %v524_v47, %v426_v50  ;;  %v536_v56 = vmul.f32 %v528_v49, %v427_v7  ;;  %v533_v57 = vmul.f32 %v516_v51, %v424_v48  ;;  %v534_v58 = vmul.f32 %v520_v52, %v425_v62 }
 0x154   :  { %v570_v5 = vmul.f32 %v528_v49, %v3719_v54  ;;  %v568_v50 = vmul.f32 %v520_v52, %v3717_v53  ;;  %v567_v48 = vmul.f32 %v516_v51, %v3705_v45  ;;  %v569_v62 = vmul.f32 %v524_v47, %v3707_v46  ;;  %v631_v53 = vld [vmem:[#allocation4 + $0x1b0] sm:$0xff] }
 0x155   :  { %v542_v59 = vcombine.low %v535_v55, %v536_v56  ;;  %v541_v60 = vcombine.low %v533_v57, %v534_v58  ;;  %v695_v45 = vld [vmem:[#allocation4 + $0x5b0] sm:$0xff]  ;;  %v2955_v24 = vcombine.high %v629_v17, %v631_v53  ;;  %v2954_v29 = vcombine.low %v629_v17, %v631_v53 }
 0x156   :  { %v3019_v25 = vcombine.high %v693_v18, %v695_v45  ;;  %v3018_v30 = vcombine.low %v693_v18, %v695_v45  ;;  %v681_v47 = vld [vmem:[#allocation4 + $0x4d0] sm:$0xff] }
 0x157   :  { %v556_v61 = vrot.slane %v542_v59, %v3733_v23  ;;  %v549_v63 = vrot.slane %v541_v60, %v3733_v23  ;;  %v683_v49 = vld [vmem:[#allocation4 + $0x4f0] sm:$0xff] }
 0x158   :  { %v3007_v56 = vcombine.high %v681_v47, %v683_v49  ;;  %v613_v57 = vld [vmem:[#allocation4 + $0x90] sm:$0xff] }
 0x159   :  { %v557_v1 = vcombine.low %v549_v63, %v556_v61  ;;  %v615_v58 = vld [vmem:[#allocation4 + $0xb0] sm:$0xff]  ;;  %v3006_v63 = vcombine.low %v681_v47, %v683_v49 }
 0x15a   :  { %v677_v59 = vld [vmem:[#allocation4 + $0x490] sm:$0xff] }
 0x15b   :  { %v564_v3 = vrot.slane %v557_v1, %v3733_v23  ;;  %v679_v60 = vld [vmem:[#allocation4 + $0x4b0] sm:$0xff]  ;;  %v2939_v1 = vcombine.high %v613_v57, %v615_v58 }
 0x15c   :  { %v729_v17 = vld [vmem:[#allocation4 + $0x7d0] sm:$0xff] }
 0x15d   :  { %v566_v4 = vsub.f32 %v511_v2, %v564_v3  ;;  %v3003_v2 = vcombine.high %v677_v59, %v679_v60  ;;  %v609_v3 = vld [vmem:[#allocation4 + $0x50] sm:$0xff] }
 0x15e   :  { %v731_v53 = vld [vmem:[#allocation4 + $0x7f0] sm:$0xff] }
 0x15f   :  { %v579_v6 = vrot.slane %v566_v4, %v3743_v40  ;;  %v587_v7 = vrot.slane %v566_v4, %v527_v36  ;;  %v575_v8 = vrot.slane %v566_v4, %v3740_v33  ;;  %v583_v9 = vrot.slane %v566_v4, %v523_v35  ;;  %v623_v35 = vld [vmem:[#allocation4 + $0x130] sm:$0xff] }
 0x160   :  { %v685_v36 = vld [vmem:[#allocation4 + $0x510] sm:$0xff]  ;;  %v2947_v39 = vcombine.high %v621_v34, %v623_v35  ;;  %v2946_v51 = vcombine.low %v621_v34, %v623_v35  ;;  %v3054_v28 = vcombine.low %v729_v17, %v731_v53 }
 0x161   :  { %v593_v10 = vadd.f32 %v579_v6, %v568_v50  ;;  %v595_v11 = vadd.f32 %v587_v7, %v570_v5  ;;  %v592_v12 = vadd.f32 %v575_v8, %v567_v48  ;;  %v594_v13 = vadd.f32 %v583_v9, %v569_v62  ;;  %v611_v4 = vld [vmem:[#allocation4 + $0x70] sm:$0xff] }
 0x162   :  { %v3011_v41 = vcombine.high %v685_v36, %v687_v44  ;;  %v3010_v52 = vcombine.low %v685_v36, %v687_v44  ;;  %v673_v5 = vld [vmem:[#allocation4 + $0x450] sm:$0xff]  ;;  %v2938_v48 = vcombine.low %v613_v57, %v615_v58  ;;  %v3002_v62 = vcombine.low %v677_v59, %v679_v60 }
 0x163   :  { %v597_v14 = vmax.f32 %v593_v10, 0.0  ;;  %v599_v15 = vmax.f32 %v595_v11, 0.0  ;;  %v596_v16 = vmax.f32 %v592_v12, 0.0  ;;  %v598_v54 = vmax.f32 %v594_v13, 0.0  ;;  %v675_v50 = vld [vmem:[#allocation4 + $0x470] sm:$0xff] }
 0x164   :  { %v2935_v6 = vcombine.high %v609_v3, %v611_v4  ;;  %v2999_v7 = vcombine.high %v673_v5, %v675_v50  ;;  %v605_v8 = vld [vmem:[#allocation4 + $0x10] sm:$0xff]  ;;  %v2934_v12 = vcombine.low %v609_v3, %v611_v4  ;;  %v2998_v13 = vcombine.low %v673_v5, %v675_v50 }
 0x165   :  { %v601_v19 = vpack.c.bf16 %v597_v14, %v597_v14  ;;  %v603_v46 = vpack.c.bf16 %v599_v15, %v599_v15  ;;  %v3759_v20 = vpack.c.bf16 %v596_v16, %v596_v16  ;;  %v3761_v21 = vpack.c.bf16 %v598_v54, %v598_v54  ;;  %v607_v9 = vld [vmem:[#allocation4 + $0x30] sm:$0xff] }
 0x166   :  { %v669_v10 = vld [vmem:[#allocation4 + $0x410] sm:$0xff]  ;;  %v2931_v14 = vcombine.high %v605_v8, %v607_v9  ;;  %v2930_v18 = vcombine.low %v605_v8, %v607_v9 }
 0x167   :  { %1404 = vmatprep.mubr.bf16.mxu0 %v601_v19  ;;  %1445 = vmatprep.mubr.bf16.mxu1 %v603_v46  ;;  %v671_v11 = vld [vmem:[#allocation4 + $0x430] sm:$0xff] }
 0x168   :  { %1405 = vmatmul.mubr.bf16.vlgmr.msra.gmra.mxu0 %v3759_v20  ;;  %1446 = vmatmul.mubr.bf16.vlgmr.msra.gmra.mxu1 %v3761_v21  ;;  %v2995_v15 = vcombine.high %v669_v10, %v671_v11  ;;  %v665_v16 = vld [vmem:[#allocation4 + $0x3d0] sm:$0xff]  ;;  %v2994_v45 = vcombine.low %v669_v10, %v671_v11 }
 0x169   :  { %1455 = vmatpush1.bf16.msra.mxu0 %v2958_v42  ;;  %1496 = vmatpush1.bf16.msra.mxu1 %v3022_v43  ;;  %v617_v42 = vld [vmem:[#allocation4 + $0xd0] sm:$0xff] }
 0x16a   :  { %1486 = vmatprep.mubr.bf16.mxu0 %v601_v19  ;;  %1527 = vmatprep.mubr.bf16.mxu1 %v603_v46  ;;  %v619_v43 = vld [vmem:[#allocation4 + $0xf0] sm:$0xff]  ;;  %v3055_v46 = vcombine.high %v729_v17, %v731_v53 }
 0x16b   :  { %1456 = vmatprep.subr.bf16.mxu0 %v2955_v24  ;;  %1497 = vmatprep.subr.bf16.mxu1 %v3019_v25  ;;  %v2943_v55 = vcombine.high %v617_v42, %v619_v43  ;;  %v2942_v61 = vcombine.low %v617_v42, %v619_v43  ;;  %v667_v54 = vld [vmem:[#allocation4 + $0x3f0] sm:$0xff] }
 0x16c   :  { %v2991_v19 = vcombine.high %v665_v16, %v667_v54  ;;  %v663_v24 = vld [vmem:[#allocation4 + $0x3b0] sm:$0xff]  ;;  %v2990_v27 = vcombine.low %v665_v16, %v667_v54 }
 0x16d   :  { %1457 = vmatpush1.bf16.msra.mxu0 %v2954_v29  ;;  %1498 = vmatpush1.bf16.msra.mxu1 %v3018_v30  ;;  %v725_v25 = vld [vmem:[#allocation4 + $0x790] sm:$0xff]  ;;  %v2987_v29 = vcombine.high %v661_v22, %v663_v24  ;;  %v2986_v36 = vcombine.low %v661_v22, %v663_v24  ;;  %v3249_v24 = vld [vmem:[#allocation6 + $0xec] ss:$16 sps:$4 sm:$0xff]  }
 0x16e   :  { %1458 = vmatprep.subr.bf16.mxu0 %v2951_v31  ;;  %1499 = vmatprep.subr.bf16.mxu1 %v3015_v32  ;;  %v3051_v30 = vcombine.high %v725_v25, %v727_v26  ;;  %v657_v31 = vld [vmem:[#allocation4 + $0x350] sm:$0xff]  ;;  %v3050_v44 = vcombine.low %v725_v25, %v727_v26  ;;  %v3247_v26 = vld [vmem:[#allocation6 + $0xe8] ss:$16 sps:$4 sm:$0xff]  }
 0x16f   :  { %v659_v32 = vld [vmem:[#allocation4 + $0x370] sm:$0xff] }
 0x170   :  { %v721_v34 = vld [vmem:[#allocation4 + $0x750] sm:$0xff]  ;;  %v2982_v47 = vcombine.low %v657_v31, %v659_v32 }
 0x171   :  { %1459 = vmatpush1.bf16.msra.mxu0 %v2950_v37  ;;  %1500 = vmatpush1.bf16.msra.mxu1 %v3014_v38  ;;  %v723_v35 = vld [vmem:[#allocation4 + $0x770] sm:$0xff]  ;;  %v2983_v37 = vcombine.high %v657_v31, %v659_v32 }
 0x172   :  { %1460 = vmatprep.subr.bf16.mxu0 %v2947_v39  ;;  %1501 = vmatprep.subr.bf16.mxu1 %v3011_v41  ;;  %v3047_v38 = vcombine.high %v721_v34, %v723_v35  ;;  %v653_v39 = vld [vmem:[#allocation4 + $0x310] sm:$0xff]  ;;  %v3046_v49 = vcombine.low %v721_v34, %v723_v35  ;;  %v3267_v35 = vld [vmem:[#allocation6 + $0x8c] ss:$16 sps:$4 sm:$0xff]  }
 0x173   :  { %v655_v41 = vld [vmem:[#allocation4 + $0x330] sm:$0xff] }
 0x174   :  { %v717_v42 = vld [vmem:[#allocation4 + $0x710] sm:$0xff]  ;;  %v2978_v59 = vcombine.low %v653_v39, %v655_v41 }
 0x175   :  { %1461 = vmatpush1.bf16.msra.mxu0 %v2946_v51  ;;  %1502 = vmatpush1.bf16.msra.mxu1 %v3010_v52  ;;  %v719_v43 = vld [vmem:[#allocation4 + $0x730] sm:$0xff]  ;;  %v2979_v51 = vcombine.high %v653_v39, %v655_v41  ;;  %v3271_v41 = vld [vmem:[#allocation6 + $0x68] ss:$16 sps:$4 sm:$0xff]  }
 0x176   :  { %1462 = vmatprep.subr.bf16.mxu0 %v2943_v55  ;;  %1503 = vmatprep.subr.bf16.mxu1 %v3007_v56  ;;  %v3043_v52 = vcombine.high %v717_v42, %v719_v43  ;;  %v649_v55 = vld [vmem:[#allocation4 + $0x2d0] sm:$0xff]  ;;  %v3042_v60 = vcombine.low %v717_v42, %v719_v43  ;;  %v3279_v43 = vld [vmem:[#allocation6 + $0x4c] ss:$16 sps:$4 sm:$0xff]  }
 0x177   :  { %v651_v56 = vld [vmem:[#allocation4 + $0x2f0] sm:$0xff] }
 0x178   :  { %v713_v57 = vld [vmem:[#allocation4 + $0x6d0] sm:$0xff]  ;;  %v2974_v5 = vcombine.low %v649_v55, %v651_v56 }
 0x179   :  { %1463 = vmatpush1.bf16.msra.mxu0 %v2942_v61  ;;  %1504 = vmatpush1.bf16.msra.mxu1 %v3006_v63  ;;  %v715_v58 = vld [vmem:[#allocation4 + $0x6f0] sm:$0xff]  ;;  %v2975_v61 = vcombine.high %v649_v55, %v651_v56  ;;  %v3283_v56 = vld [vmem:[#allocation6 + $0x28] ss:$16 sps:$4 sm:$0xff]  }
 0x17a   :  { %1464 = vmatprep.subr.bf16.mxu0 %v2939_v1  ;;  %1505 = vmatprep.subr.bf16.mxu1 %v3003_v2  ;;  %v3039_v63 = vcombine.high %v713_v57, %v715_v58  ;;  %v645_v1 = vld [vmem:[#allocation4 + $0x290] sm:$0xff]  ;;  %v3038_v50 = vcombine.low %v713_v57, %v715_v58  ;;  %v3291_v58 = vld [vmem:[#allocation6 + $0xc] ss:$16 sps:$4 sm:$0xff]  }
 0x17b   :  { %v647_v2 = vld [vmem:[#allocation4 + $0x2b0] sm:$0xff] }
 0x17c   :  { %v709_v3 = vld [vmem:[#allocation4 + $0x690] sm:$0xff]  ;;  %v2970_v10 = vcombine.low %v645_v1, %v647_v2 }
 0x17d   :  { %1465 = vmatpush1.bf16.msra.mxu0 %v2938_v48  ;;  %1506 = vmatpush1.bf16.msra.mxu1 %v3002_v62  ;;  %v711_v4 = vld [vmem:[#allocation4 + $0x6b0] sm:$0xff]  ;;  %v2971_v48 = vcombine.high %v645_v1, %v647_v2  ;;  %v3295_v2 = vld [vmem:[#allocation6 + $0x1e8] ss:$16 sps:$4 sm:$0xff]  }
 0x17e   :  { %1466 = vmatprep.subr.bf16.mxu0 %v2935_v6  ;;  %1507 = vmatprep.subr.bf16.mxu1 %v2999_v7  ;;  %v3035_v62 = vcombine.high %v709_v3, %v711_v4  ;;  %v641_v6 = vld [vmem:[#allocation4 + $0x250] sm:$0xff]  ;;  %v3034_v11 = vcombine.low %v709_v3, %v711_v4  ;;  %v3303_v4 = vld [vmem:[#allocation6 + $0x1cc] ss:$16 sps:$4 sm:$0xff]  }
 0x17f   :  { %v643_v7 = vld [vmem:[#allocation4 + $0x270] sm:$0xff] }
 0x180   :  { %v705_v8 = vld [vmem:[#allocation4 + $0x650] sm:$0xff]  ;;  %v2966_v17 = vcombine.low %v641_v6, %v643_v7 }
 0x181   :  { %1467 = vmatpush1.bf16.msra.mxu0 %v2934_v12  ;;  %1508 = vmatpush1.bf16.msra.mxu1 %v2998_v13  ;;  %v707_v9 = vld [vmem:[#allocation4 + $0x670] sm:$0xff]  ;;  %v2967_v12 = vcombine.high %v641_v6, %v643_v7  ;;  %v3307_v7 = vld [vmem:[#allocation6 + $0x1a8] ss:$16 sps:$4 sm:$0xff]  }
 0x182   :  { %1468 = vmatprep.subr.bf16.mxu0 %v2931_v14  ;;  %1509 = vmatprep.subr.bf16.mxu1 %v2995_v15  ;;  %v3031_v13 = vcombine.high %v705_v8, %v707_v9  ;;  %v637_v14 = vld [vmem:[#allocation4 + $0x210] sm:$0xff]  ;;  %v3030_v53 = vcombine.low %v705_v8, %v707_v9  ;;  %v3315_v9 = vld [vmem:[#allocation6 + $0x18c] ss:$16 sps:$4 sm:$0xff]  }
 0x183   :  { %v639_v15 = vld [vmem:[#allocation4 + $0x230] sm:$0xff] }
 0x184   :  { %v701_v16 = vld [vmem:[#allocation4 + $0x610] sm:$0xff] }
 0x185   :  { %1469 = vmatpush1.bf16.msra.mxu0 %v2930_v18  ;;  %1510 = vmatpush1.bf16.msra.mxu1 %v2994_v45  ;;  %v703_v54 = vld [vmem:[#allocation4 + $0x630] sm:$0xff]  ;;  %v2963_v18 = vcombine.high %v637_v14, %v639_v15 }
 0x186   :  { %1470 = vmatprep.subr.bf16.mxu0 %v2991_v19  ;;  %1511 = vmatprep.subr.bf16.mxu1 %v3055_v46  ;;  %v3027_v45 = vcombine.high %v701_v16, %v703_v54  ;;  %v2962_v19 = vcombine.low %v637_v14, %v639_v15  ;;  %v3026_v46 = vcombine.low %v701_v16, %v703_v54  ;;  %v3246_v22 = vld [vmem:[#allocation6 + $0xe4] ss:$16 sps:$4 sm:$0xff]   ;;  %v3244_v25 = vld [vmem:[#allocation6 + $0xe0] ss:$16 sps:$4 sm:$0xff]   ;;  %v3319_v15 = vld [vmem:[#allocation6 + $0x168] ss:$16 sps:$4 sm:$0xff]  }
 0x187   :  { %v3258_v31 = vld [vmem:[#allocation6 + $0xa4] ss:$16 sps:$4 sm:$0xff]   ;;  %v3256_v32 = vld [vmem:[#allocation6 + $0xa0] ss:$16 sps:$4 sm:$0xff]   ;;  %v3327_v54 = vld [vmem:[#allocation6 + $0x14c] ss:$16 sps:$4 sm:$0xff]  }
 0x188   :  { %v3264_v34 = vld [vmem:[#allocation6 + $0x84] ss:$16 sps:$4 sm:$0xff]   ;;  %v3268_v39 = vld [vmem:[#allocation6 + $0x60] ss:$16 sps:$4 sm:$0xff]  }
 0x189   :  { %1471 = vmatpush2.bf16.msra.mxu0 %v2990_v27  ;;  %1512 = vmatpush2.bf16.msra.mxu1 %v3054_v28  ;;  %v3252_v27 = vld [vmem:[#allocation6 + $0xc4] ss:$16 sps:$4 sm:$0xff]   ;;  %v3255_v28 = vld [vmem:[#allocation6 + $0xcc] ss:$16 sps:$4 sm:$0xff]   ;;  %v3280_v55 = vld [vmem:[#allocation6 + $0x20] ss:$16 sps:$4 sm:$0xff]  }
 0x18a   :  { %1472 = vmatprep.subr.bf16.mxu0 %v2987_v29  ;;  %1513 = vmatprep.subr.bf16.mxu1 %v3051_v30  ;;  %v3250_v29 = vld [vmem:[#allocation6 + $0xc0] ss:$16 sps:$4 sm:$0xff]   ;;  %v3253_v30 = vld [vmem:[#allocation6 + $0xc8] ss:$16 sps:$4 sm:$0xff]   ;;  %v3276_v42 = vld [vmem:[#allocation6 + $0x44] ss:$16 sps:$4 sm:$0xff]  }
 0x18b   :  { %v3288_v57 = vld [vmem:[#allocation6 + $0x4] ss:$16 sps:$4 sm:$0xff]   ;;  %v3292_v1 = vld [vmem:[#allocation6 + $0x1e0] ss:$16 sps:$4 sm:$0xff]  }
 0x18c   :  { %v3300_v3 = vld [vmem:[#allocation6 + $0x1c4] ss:$16 sps:$4 sm:$0xff]   ;;  %v3304_v6 = vld [vmem:[#allocation6 + $0x1a0] ss:$16 sps:$4 sm:$0xff]  }
 0x18d   :  { %1473 = vmatpush2.bf16.msra.mxu0 %v2986_v36  ;;  %1514 = vmatpush2.bf16.msra.mxu1 %v3050_v44  ;;  %v3262_v36 = vld [vmem:[#allocation6 + $0x80] ss:$16 sps:$4 sm:$0xff]   ;;  %v3265_v44 = vld [vmem:[#allocation6 + $0x88] ss:$16 sps:$4 sm:$0xff]   ;;  %v3312_v8 = vld [vmem:[#allocation6 + $0x184] ss:$16 sps:$4 sm:$0xff]  }
 0x18e   :  { %1474 = vmatprep.subr.bf16.mxu0 %v2983_v37  ;;  %1515 = vmatprep.subr.bf16.mxu1 %v3047_v38  ;;  %v3270_v37 = vld [vmem:[#allocation6 + $0x64] ss:$16 sps:$4 sm:$0xff]   ;;  %v3273_v38 = vld [vmem:[#allocation6 + $0x6c] ss:$16 sps:$4 sm:$0xff]   ;;  %v3316_v14 = vld [vmem:[#allocation6 + $0x160] ss:$16 sps:$4 sm:$0xff]  }
 0x18f   :  { %v3324_v16 = vld [vmem:[#allocation6 + $0x144] ss:$16 sps:$4 sm:$0xff]  }
 0x191   :  { %1475 = vmatpush2.bf16.msra.mxu0 %v2982_v47  ;;  %1516 = vmatpush2.bf16.msra.mxu1 %v3046_v49  ;;  %v3274_v47 = vld [vmem:[#allocation6 + $0x40] ss:$16 sps:$4 sm:$0xff]   ;;  %v3277_v49 = vld [vmem:[#allocation6 + $0x48] ss:$16 sps:$4 sm:$0xff]  }
 0x192   :  { %1476 = vmatprep.subr.bf16.mxu0 %v2979_v51  ;;  %1517 = vmatprep.subr.bf16.mxu1 %v3043_v52  ;;  %v3282_v51 = vld [vmem:[#allocation6 + $0x24] ss:$16 sps:$4 sm:$0xff]   ;;  %v3285_v52 = vld [vmem:[#allocation6 + $0x2c] ss:$16 sps:$4 sm:$0xff]  }
 0x195   :  { %1477 = vmatpush2.bf16.msra.mxu0 %v2978_v59  ;;  %1518 = vmatpush2.bf16.msra.mxu1 %v3042_v60  ;;  %v3286_v59 = vld [vmem:[#allocation6] ss:$16 sps:$4 sm:$0xff]   ;;  %v3289_v60 = vld [vmem:[#allocation6 + $0x8] ss:$16 sps:$4 sm:$0xff]  }
 0x196   :  { %1478 = vmatprep.subr.bf16.mxu0 %v2975_v61  ;;  %1519 = vmatprep.subr.bf16.mxu1 %v3039_v63  ;;  %v3294_v61 = vld [vmem:[#allocation6 + $0x1e4] ss:$16 sps:$4 sm:$0xff]   ;;  %v3297_v63 = vld [vmem:[#allocation6 + $0x1ec] ss:$16 sps:$4 sm:$0xff]  }
 0x199   :  { %1479 = vmatpush2.bf16.msra.mxu0 %v2974_v5  ;;  %1520 = vmatpush2.bf16.msra.mxu1 %v3038_v50  ;;  %v3298_v5 = vld [vmem:[#allocation6 + $0x1c0] ss:$16 sps:$4 sm:$0xff]   ;;  %v3301_v50 = vld [vmem:[#allocation6 + $0x1c8] ss:$16 sps:$4 sm:$0xff]  }
 0x19a   :  { %1480 = vmatprep.subr.bf16.mxu0 %v2971_v48  ;;  %1521 = vmatprep.subr.bf16.mxu1 %v3035_v62  ;;  %v3306_v48 = vld [vmem:[#allocation6 + $0x1a4] ss:$16 sps:$4 sm:$0xff]   ;;  %v3309_v62 = vld [vmem:[#allocation6 + $0x1ac] ss:$16 sps:$4 sm:$0xff]  }
 0x19d   :  { %1481 = vmatpush2.bf16.msra.mxu0 %v2970_v10  ;;  %1522 = vmatpush2.bf16.msra.mxu1 %v3034_v11  ;;  %v3310_v10 = vld [vmem:[#allocation6 + $0x180] ss:$16 sps:$4 sm:$0xff]   ;;  %v3313_v11 = vld [vmem:[#allocation6 + $0x188] ss:$16 sps:$4 sm:$0xff]  }
 0x19e   :  { %1482 = vmatprep.subr.bf16.mxu0 %v2967_v12  ;;  %1523 = vmatprep.subr.bf16.mxu1 %v3031_v13  ;;  %v3318_v12 = vld [vmem:[#allocation6 + $0x164] ss:$16 sps:$4 sm:$0xff]   ;;  %v3321_v13 = vld [vmem:[#allocation6 + $0x16c] ss:$16 sps:$4 sm:$0xff]  }
 0x1a1   :  { %1483 = vmatpush2.bf16.msra.mxu0 %v2966_v17  ;;  %1524 = vmatpush2.bf16.msra.mxu1 %v3030_v53  ;;  %v3322_v17 = vld [vmem:[#allocation6 + $0x140] ss:$16 sps:$4 sm:$0xff]   ;;  %v3325_v53 = vld [vmem:[#allocation6 + $0x148] ss:$16 sps:$4 sm:$0xff]  }
 0x1a2   :  { %1484 = vmatprep.subr.bf16.mxu0 %v2963_v18  ;;  %1525 = vmatprep.subr.bf16.mxu1 %v3027_v45  ;;  %v3330_v18 = vld [vmem:[#allocation6 + $0x124] ss:$16 sps:$4 sm:$0xff]   ;;  %v3333_v45 = vld [vmem:[#allocation6 + $0x12c] ss:$16 sps:$4 sm:$0xff]  }
 0x1a5   :  { %1485 = vmatpush2.bf16.msra.mxu0 %v2962_v19  ;;  %1526 = vmatpush2.bf16.msra.mxu1 %v3026_v46  ;;  %v3328_v19 = vld [vmem:[#allocation6 + $0x120] ss:$16 sps:$4 sm:$0xff]   ;;  %v3331_v46 = vld [vmem:[#allocation6 + $0x128] ss:$16 sps:$4 sm:$0xff]  }
 0x1a6   :  { %2043 = vmatprep.subr.bf16.mxu0 %v3246_v22  ;;  %2084 = vmatprep.subr.bf16.mxu1 %v3249_v24  ;;  %v3336_v22 = vld [vmem:[#allocation6 + $0x104] ss:$16 sps:$4 sm:$0xff]   ;;  %v3339_v24 = vld [vmem:[#allocation6 + $0x10c] ss:$16 sps:$4 sm:$0xff]  }
 0x1a8   :  { %1487 = vmatmul.mubr.bf16.vlgmr.msra.gmra.mxu0 %v3759_v20  ;;  %1528 = vmatmul.mubr.bf16.vlgmr.msra.gmra.mxu1 %v3761_v21  ;;  %v3261_v20 = vld [vmem:[#allocation6 + $0xac] ss:$16 sps:$4 sm:$0xff]   ;;  %v3259_v21 = vld [vmem:[#allocation6 + $0xa8] ss:$16 sps:$4 sm:$0xff]  }
 0x1a9   :  { %2044 = vmatpush1.bf16.msra.mxu0 %v3244_v25  ;;  %2085 = vmatpush1.bf16.msra.mxu1 %v3247_v26 }
 0x1aa   :  { %2045 = vmatprep.subr.bf16.mxu0 %v3252_v27  ;;  %2086 = vmatprep.subr.bf16.mxu1 %v3255_v28  ;;  %v3334_v28 = vld [vmem:[#allocation6 + $0x100] ss:$16 sps:$4 sm:$0xff]  }
 0x1ad   :  { %2046 = vmatpush1.bf16.msra.mxu0 %v3250_v29  ;;  %2087 = vmatpush1.bf16.msra.mxu1 %v3253_v30  ;;  %v3337_v29 = vld [vmem:[#allocation6 + $0x108] ss:$16 sps:$4 sm:$0xff]  }
 0x1ae   :  { %2047 = vmatprep.subr.bf16.mxu0 %v3258_v31  ;;  %2088 = vmatprep.subr.bf16.mxu1 %v3261_v20 }
 0x1b1   :  { %2048 = vmatpush1.bf16.msra.mxu0 %v3256_v32  ;;  %2089 = vmatpush1.bf16.msra.mxu1 %v3259_v21 }
 0x1b2   :  { %2049 = vmatprep.subr.bf16.mxu0 %v3264_v34  ;;  %2090 = vmatprep.subr.bf16.mxu1 %v3267_v35 }
 0x1b5   :  { %2050 = vmatpush1.bf16.msra.mxu0 %v3262_v36  ;;  %2091 = vmatpush1.bf16.msra.mxu1 %v3265_v44 }
 0x1b6   :  { %2051 = vmatprep.subr.bf16.mxu0 %v3270_v37  ;;  %2092 = vmatprep.subr.bf16.mxu1 %v3273_v38 }
 0x1b9   :  { %2052 = vmatpush1.bf16.msra.mxu0 %v3268_v39  ;;  %2093 = vmatpush1.bf16.msra.mxu1 %v3271_v41 }
 0x1ba   :  { %2053 = vmatprep.subr.bf16.mxu0 %v3276_v42  ;;  %2094 = vmatprep.subr.bf16.mxu1 %v3279_v43 }
 0x1bd   :  { %2054 = vmatpush1.bf16.msra.mxu0 %v3274_v47  ;;  %2095 = vmatpush1.bf16.msra.mxu1 %v3277_v49 }
 0x1be   :  { %2055 = vmatprep.subr.bf16.mxu0 %v3282_v51  ;;  %2096 = vmatprep.subr.bf16.mxu1 %v3285_v52 }
 0x1c1   :  { %2056 = vmatpush1.bf16.msra.mxu0 %v3280_v55  ;;  %2097 = vmatpush1.bf16.msra.mxu1 %v3283_v56 }
 0x1c2   :  { %2057 = vmatprep.subr.bf16.mxu0 %v3288_v57  ;;  %2098 = vmatprep.subr.bf16.mxu1 %v3291_v58 }
 0x1c5   :  { %2058 = vmatpush1.bf16.msra.mxu0 %v3286_v59  ;;  %2099 = vmatpush1.bf16.msra.mxu1 %v3289_v60 }
 0x1c6   :  { %2059 = vmatprep.subr.bf16.mxu0 %v3294_v61  ;;  %2100 = vmatprep.subr.bf16.mxu1 %v3297_v63 }
 0x1c9   :  { %2060 = vmatpush2.bf16.msra.mxu0 %v3292_v1  ;;  %2101 = vmatpush2.bf16.msra.mxu1 %v3295_v2 }
 0x1ca   :  { %2061 = vmatprep.subr.bf16.mxu0 %v3300_v3  ;;  %2102 = vmatprep.subr.bf16.mxu1 %v3303_v4 }
 0x1cd   :  { %2062 = vmatpush2.bf16.msra.mxu0 %v3298_v5  ;;  %2103 = vmatpush2.bf16.msra.mxu1 %v3301_v50 }
 0x1ce   :  { %2063 = vmatprep.subr.bf16.mxu0 %v3306_v48  ;;  %2104 = vmatprep.subr.bf16.mxu1 %v3309_v62 }
 0x1d1   :  { %2064 = vmatpush2.bf16.msra.mxu0 %v3304_v6  ;;  %2105 = vmatpush2.bf16.msra.mxu1 %v3307_v7 }
 0x1d2   :  { %2065 = vmatprep.subr.bf16.mxu0 %v3312_v8  ;;  %2106 = vmatprep.subr.bf16.mxu1 %v3315_v9 }
 0x1d5   :  { %2066 = vmatpush2.bf16.msra.mxu0 %v3310_v10  ;;  %2107 = vmatpush2.bf16.msra.mxu1 %v3313_v11 }
 0x1d6   :  { %2067 = vmatprep.subr.bf16.mxu0 %v3318_v12  ;;  %2108 = vmatprep.subr.bf16.mxu1 %v3321_v13 }
 0x1d9   :  { %2068 = vmatpush2.bf16.msra.mxu0 %v3316_v14  ;;  %2109 = vmatpush2.bf16.msra.mxu1 %v3319_v15 }
 0x1da   :  { %2069 = vmatprep.subr.bf16.mxu0 %v3324_v16  ;;  %2110 = vmatprep.subr.bf16.mxu1 %v3327_v54 }
 0x1dd   :  { %2070 = vmatpush2.bf16.msra.mxu0 %v3322_v17  ;;  %2111 = vmatpush2.bf16.msra.mxu1 %v3325_v53 }
 0x1de   :  { %2071 = vmatprep.subr.bf16.mxu0 %v3330_v18  ;;  %2112 = vmatprep.subr.bf16.mxu1 %v3333_v45 }
 0x1e1   :  { %2072 = vmatpush2.bf16.msra.mxu0 %v3328_v19  ;;  %2113 = vmatpush2.bf16.msra.mxu1 %v3331_v46 }
 0x1e2   :  { %2073 = vmatprep.subr.bf16.mxu0 %v3336_v22  ;;  %2114 = vmatprep.subr.bf16.mxu1 %v3339_v24 }
 0x1e5   :  { %2074 = vmatpush2.bf16.msra.mxu0 %v3334_v28  ;;  %2115 = vmatpush2.bf16.msra.mxu1 %v3337_v29 }
 0x228   :  { %v1406_v25 = vpop.f32.mrf.mxu0  ;;  %v1447_v26 = vpop.f32.mrf.mxu1 }
 0x229   :  { %v1448_v27 = vadd.f32 %v1447_v26, %v1406_v25 }
 0x22a   :  { %v1408_v30 = vpop.f32.mrf.mxu0  ;;  %v1449_v31 = vpop.f32.mrf.mxu1 }
 0x22b   :  { %v1450_v20 = vadd.f32 %v1449_v31, %v1408_v30 }
 0x22c   :  { %v1410_v32 = vpop.f32.mrf.mxu0  ;;  %v1451_v21 = vpop.f32.mrf.mxu1 }
 0x22e   :  { %v1411_v34 = vpop.f32.mrf.mxu0  ;;  %v1452_v35 = vpop.f32.mrf.mxu1 }
 0x22f   :  { %v1583_v34 = vld [vmem:[%s3854_s5] sm:$0x3] }
 0x268   :  { %v1488_v36 = vpop.f32.mrf.mxu0  ;;  %v1529_v44 = vpop.f32.mrf.mxu1 }
 0x269   :  { %v1530_v37 = vadd.f32 %v1529_v44, %v1488_v36 }
 0x26a   :  { %v1490_v38 = vpop.f32.mrf.mxu0  ;;  %v1531_v39 = vpop.f32.mrf.mxu1 }
 0x26b   :  { %v1538_v41 = vrot.slane %v1530_v37, 6  ;;  %v1532_v42 = vadd.f32 %v1531_v39, %v1490_v38 }
 0x26c   :  { %v1492_v43 = vpop.f32.mrf.mxu0  ;;  %v1533_v47 = vpop.f32.mrf.mxu1 }
 0x26d   :  { %v1542_v49 = vsel %vm395_vm0, %v1448_v27, %v1538_v41  ;;  %v1539_v51 = vrot.slane %v1532_v42, 6 }
 0x26e   :  { %v1545_v52 = vsel %vm1544_vm1, %v1542_v49, 0.0  ;;  %v1561_v55 = vmul.f32 %v1542_v49, %v1542_v49  ;;  %v1493_v56 = vpop.f32.mrf.mxu0  ;;  %v1534_v57 = vpop.f32.mrf.mxu1 }
 0x26f   :  { %v1546_v58 = vrot.slane %v1545_v52, 4  ;;  %v1543_v59 = vsel %vm395_vm0, %v1450_v20, %v1539_v51  ;;  %v1607_v51 = vld [vmem:[%s3855_s6] sm:$0x3] }
 0x270   :  { %v1563_v60 = vsel %vm1544_vm1, %v1561_v55, 0.0  ;;  %v1552_v61 = vsel %vm1544_vm1, %v1543_v59, 0.0  ;;  %v1562_v63 = vmul.f32 %v1543_v59, %v1543_v59 }
 0x271   :  { %v1547_v1 = vadd.f32 %v1546_v58, %v1545_v52  ;;  %v1564_v2 = vrot.slane %v1563_v60, 4  ;;  %v1553_v3 = vrot.slane %v1552_v61, 4 }
 0x272   :  { %v1570_v4 = vsel %vm1544_vm1, %v1562_v63, 0.0 }
 0x273   :  { %v1548_v5 = vrot.slane %v1547_v1, 2  ;;  %v1565_v50 = vadd.f32 %v1564_v2, %v1563_v60  ;;  %v1554_v48 = vadd.f32 %v1553_v3, %v1552_v61  ;;  %v1571_v62 = vrot.slane %v1570_v4, 4  ;;  %v3343_v2 = vld [vmem:[#allocation7 + $0xe8] ss:$16 sps:$4 sm:$0xff]   ;;  %v3348_v3 = vld [vmem:[#allocation7 + $0xc4] ss:$16 sps:$4 sm:$0xff]  }
 0x275   :  { %v1549_v6 = vadd.f32 %v1548_v5, %v1547_v1  ;;  %v1566_v7 = vrot.slane %v1565_v50, 2  ;;  %v1555_v8 = vrot.slane %v1554_v48, 2  ;;  %v1572_v9 = vadd.f32 %v1571_v62, %v1570_v4  ;;  %v3342_v1 = vld [vmem:[#allocation7 + $0xe4] ss:$16 sps:$4 sm:$0xff]   ;;  %v3351_v4 = vld [vmem:[#allocation7 + $0xcc] ss:$16 sps:$4 sm:$0xff]  }
 0x276   :  { %2378 = vmatprep.subr.bf16.mxu0 %v3342_v1  ;;  %v3346_v5 = vld [vmem:[#allocation7 + $0xc0] ss:$16 sps:$4 sm:$0xff]   ;;  %v3357_v62 = vld [vmem:[#allocation7 + $0xac] ss:$16 sps:$4 sm:$0xff]  }
 0x277   :  { %v1550_v10 = vrot.slane %v1549_v6, 1  ;;  %v1567_v11 = vadd.f32 %v1566_v7, %v1565_v50  ;;  %v1556_v12 = vadd.f32 %v1555_v8, %v1554_v48  ;;  %v1573_v13 = vrot.slane %v1572_v9, 2  ;;  %v3349_v50 = vld [vmem:[#allocation7 + $0xc8] ss:$16 sps:$4 sm:$0xff]   ;;  %v3354_v48 = vld [vmem:[#allocation7 + $0xa4] ss:$16 sps:$4 sm:$0xff]  }
 0x278   :  { %v3355_v7 = vld [vmem:[#allocation7 + $0xa8] ss:$16 sps:$4 sm:$0xff]   ;;  %v3360_v8 = vld [vmem:[#allocation7 + $0x84] ss:$16 sps:$4 sm:$0xff]  }
 0x279   :  { %v1551_v14 = vadd.f32 %v1550_v10, %v1549_v6  ;;  %v1568_v15 = vrot.slane %v1567_v11, 1  ;;  %v1557_v16 = vrot.slane %v1556_v12, 1  ;;  %v1574_v54 = vadd.f32 %v1573_v13, %v1572_v9  ;;  %v3352_v6 = vld [vmem:[#allocation7 + $0xa0] ss:$16 sps:$4 sm:$0xff]   ;;  %v3363_v9 = vld [vmem:[#allocation7 + $0x8c] ss:$16 sps:$4 sm:$0xff]  }
 0x27a   :  { %v3358_v10 = vld [vmem:[#allocation7 + $0x80] ss:$16 sps:$4 sm:$0xff]   ;;  %v3369_v13 = vld [vmem:[#allocation7 + $0x6c] ss:$16 sps:$4 sm:$0xff]  }
 0x27b   :  { %v1559_v17 = vmul.f32 0.25, %v1551_v14  ;;  %v1569_v53 = vadd.f32 %v1568_v15, %v1567_v11  ;;  %v1558_v18 = vadd.f32 %v1557_v16, %v1556_v12  ;;  %v1575_v45 = vrot.slane %v1574_v54, 1  ;;  %v3361_v11 = vld [vmem:[#allocation7 + $0x88] ss:$16 sps:$4 sm:$0xff]   ;;  %v3366_v12 = vld [vmem:[#allocation7 + $0x64] ss:$16 sps:$4 sm:$0xff]  }
 0x27c   :  { %v3364_v14 = vld [vmem:[#allocation7 + $0x60] ss:$16 sps:$4 sm:$0xff]   ;;  %v3367_v15 = vld [vmem:[#allocation7 + $0x68] ss:$16 sps:$4 sm:$0xff]   ;;  %v3372_v16 = vld [vmem:[#allocation7 + $0x44] ss:$16 sps:$4 sm:$0xff]  }
 0x27d   :  { %v1577_v19 = vmul.f32 0.25, %v1569_v53  ;;  %v1579_v46 = vmul.f32 %v1559_v17, %v1559_v17  ;;  %v1576_v22 = vadd.f32 %v1575_v45, %v1574_v54  ;;  %v1560_v24 = vmul.f32 0.25, %v1558_v18  ;;  %v3375_v54 = vld [vmem:[#allocation7 + $0x4c] ss:$16 sps:$4 sm:$0xff]   ;;  %v3373_v53 = vld [vmem:[#allocation7 + $0x48] ss:$16 sps:$4 sm:$0xff]  }
 0x27e   :  { %v3378_v18 = vld [vmem:[#allocation7 + $0x24] ss:$16 sps:$4 sm:$0xff]   ;;  %v3381_v45 = vld [vmem:[#allocation7 + $0x2c] ss:$16 sps:$4 sm:$0xff]  }
 0x27f   :  { %v1581_v25 = vsub.f32 %v1577_v19, %v1579_v46  ;;  %v1578_v26 = vmul.f32 0.25, %v1576_v22  ;;  %v1580_v27 = vmul.f32 %v1560_v24, %v1560_v24  ;;  %v3376_v19 = vld [vmem:[#allocation7 + $0x20] ss:$16 sps:$4 sm:$0xff]   ;;  %v3379_v46 = vld [vmem:[#allocation7 + $0x28] ss:$16 sps:$4 sm:$0xff]  }
 0x280   :  { %v3384_v22 = vld [vmem:[#allocation7 + $0x4] ss:$16 sps:$4 sm:$0xff]  }
 0x281   :  { %v1584_v28 = vadd.f32 1e-05, %v1581_v25  ;;  %v1582_v29 = vsub.f32 %v1578_v26, %v1580_v27  ;;  %v3382_v25 = vld [vmem:[#allocation7] ss:$16 sps:$4 sm:$0xff]   ;;  %v3385_v26 = vld [vmem:[#allocation7 + $0x8] ss:$16 sps:$4 sm:$0xff]  }
 0x283   :  { %v1585_v30 = vadd.f32 1e-05, %v1582_v29  ;;  %3444 = vrsqrt.f32 %v1584_v28 }
 0x285   :  { %3446 = vrsqrt.f32 %v1585_v30 }
 0x290   :  { %v3445_v31 = vpop.eup %3444 }
 0x292   :  { %v3447_v20 = vpop.eup %3446 }
 0x293   :  { %v1590_v32 = vcombine.low %v3445_v31, %v3447_v20 }
 0x295   :  { %v1597_v21 = vrot.slane %v1590_v32, %v3733_v23 }
 0x297   :  { %v1604_v35 = vrot.slane %v1597_v21, %v3733_v23 }
 0x299   :  { %v1606_v36 = vmul.f32 %v1604_v35, %v1583_v34 }
 0x29b   :  { %v1612_v44 = vrot.slane %v1606_v36, %v3740_v33  ;;  %v1616_v37 = vrot.slane %v1606_v36, %v3743_v40 }
 0x29d   :  { %v1619_v38 = vmul.f32 %v1612_v44, %v1559_v17  ;;  %v1620_v39 = vmul.f32 %v1616_v37, %v1560_v24  ;;  %v1641_v41 = vmul.f32 %v1616_v37, %v1543_v59  ;;  %v1640_v42 = vmul.f32 %v1612_v44, %v1542_v49  ;;  %v3370_v17 = vld [vmem:[#allocation7 + $0x40] ss:$16 sps:$4 sm:$0xff]   ;;  %v3387_v24 = vld [vmem:[#allocation7 + $0xc] ss:$16 sps:$4 sm:$0xff]  }
 0x29f   :  { %v1623_v43 = vcombine.low %v1619_v38, %v1620_v39 }
 0x2a1   :  { %v1630_v47 = vrot.slane %v1623_v43, %v3733_v23 }
 0x2a3   :  { %v1637_v52 = vrot.slane %v1630_v47, %v3733_v23  ;;  %v3340_v23 = vld [vmem:[#allocation7 + $0xe0] ss:$16 sps:$4 sm:$0xff]  }
 0x2a5   :  { %v1639_v55 = vsub.f32 %v1607_v51, %v1637_v52 }
 0x2a7   :  { %v1650_v56 = vrot.slane %v1639_v55, %v3743_v40  ;;  %v1646_v57 = vrot.slane %v1639_v55, %v3740_v33  ;;  %v3345_v40 = vld [vmem:[#allocation7 + $0xec] ss:$16 sps:$4 sm:$0xff]  }
 0x2a8   :  { %2419 = vmatprep.subr.bf16.mxu1 %v3345_v40 }
 0x2a9   :  { %v1654_v58 = vadd.f32 %v1650_v56, %v1641_v41  ;;  %v1653_v60 = vadd.f32 %v1646_v57, %v1640_v42 }
 0x2ab   :  { %v1656_v61 = vmax.f32 %v1654_v58, 0.0  ;;  %v1655_v63 = vmax.f32 %v1653_v60, 0.0 }
 0x2ad   :  { %v1658_v59 = vpack.c.bf16 %v1656_v61, %v1656_v61  ;;  %v1657_v49 = vpack.c.bf16 %v1655_v63, %v1655_v63 }
 0x2af   :  { %2075 = vmatprep.mubr.bf16.mxu0 %v1658_v59  ;;  %2116 = vmatprep.mubr.bf16.mxu1 %v1658_v59 }
 0x2b0   :  { %2076 = vmatmul.mubr.bf16.vlgmr.msra.gmra.mxu0 %v1657_v49  ;;  %2117 = vmatmul.mubr.bf16.vlgmr.msra.gmra.mxu1 %v1657_v49 }
 0x2b1   :  { %2410 = vmatprep.mubr.bf16.mxu0 %v3575_v0  ;;  %2451 = vmatprep.mubr.bf16.mxu1 %v3575_v0 }
 0x2b2   :  { %2379 = vmatpush1.bf16.msra.mxu0 %v3340_v23  ;;  %2420 = vmatpush1.bf16.msra.mxu1 %v3343_v2 }
 0x2b3   :  { %2380 = vmatprep.subr.bf16.mxu0 %v3348_v3  ;;  %2421 = vmatprep.subr.bf16.mxu1 %v3351_v4 }
 0x2b6   :  { %2381 = vmatpush1.bf16.msra.mxu0 %v3346_v5  ;;  %2422 = vmatpush1.bf16.msra.mxu1 %v3349_v50  ;;  %v2163_v5 = vld [vmem:[%s3857_s8] sm:$0x1] }
 0x2b7   :  { %2382 = vmatprep.subr.bf16.mxu0 %v3354_v48  ;;  %2423 = vmatprep.subr.bf16.mxu1 %v3357_v62  ;;  %v2167_v62 = vld [vmem:[%s3858_s9] sm:$0x1] }
 0x2ba   :  { %2383 = vmatpush1.bf16.msra.mxu0 %v3352_v6  ;;  %2424 = vmatpush1.bf16.msra.mxu1 %v3355_v7 }
 0x2bb   :  { %2384 = vmatprep.subr.bf16.mxu0 %v3360_v8  ;;  %2425 = vmatprep.subr.bf16.mxu1 %v3363_v9 }
 0x2be   :  { %2385 = vmatpush1.bf16.msra.mxu0 %v3358_v10  ;;  %2426 = vmatpush1.bf16.msra.mxu1 %v3361_v11 }
 0x2bf   :  { %2386 = vmatprep.subr.bf16.mxu0 %v3366_v12  ;;  %2427 = vmatprep.subr.bf16.mxu1 %v3369_v13 }
 0x2c2   :  { %2387 = vmatpush1.bf16.msra.mxu0 %v3364_v14  ;;  %2428 = vmatpush1.bf16.msra.mxu1 %v3367_v15  ;;  %v3388_v14 = vld [vmem:[#allocation9 + $0xe0] ss:$16 sps:$4 sm:$0xff]   ;;  %v3390_v15 = vld [vmem:[#allocation9 + $0xe4] ss:$16 sps:$4 sm:$0xff]  }
 0x2c3   :  { %2388 = vmatprep.subr.bf16.mxu0 %v3372_v16  ;;  %2429 = vmatprep.subr.bf16.mxu1 %v3375_v54  ;;  %v3391_v16 = vld [vmem:[#allocation9 + $0xe8] ss:$16 sps:$4 sm:$0xff]   ;;  %v3393_v54 = vld [vmem:[#allocation9 + $0xec] ss:$16 sps:$4 sm:$0xff]  }
 0x2c6   :  { %2389 = vmatpush1.bf16.msra.mxu0 %v3370_v17  ;;  %2430 = vmatpush1.bf16.msra.mxu1 %v3373_v53  ;;  %v3396_v17 = vld [vmem:[#allocation9 + $0xc4] ss:$16 sps:$4 sm:$0xff]   ;;  %v3399_v53 = vld [vmem:[#allocation9 + $0xcc] ss:$16 sps:$4 sm:$0xff]  }
 0x2c7   :  { %2390 = vmatprep.subr.bf16.mxu0 %v3378_v18  ;;  %2431 = vmatprep.subr.bf16.mxu1 %v3381_v45  ;;  %v3394_v18 = vld [vmem:[#allocation9 + $0xc0] ss:$16 sps:$4 sm:$0xff]   ;;  %v3397_v45 = vld [vmem:[#allocation9 + $0xc8] ss:$16 sps:$4 sm:$0xff]  }
 0x2ca   :  { %2391 = vmatpush1.bf16.msra.mxu0 %v3376_v19  ;;  %2432 = vmatpush1.bf16.msra.mxu1 %v3379_v46  ;;  %v3402_v19 = vld [vmem:[#allocation9 + $0xa4] ss:$16 sps:$4 sm:$0xff]   ;;  %v3405_v46 = vld [vmem:[#allocation9 + $0xac] ss:$16 sps:$4 sm:$0xff]  }
 0x2cb   :  { %2392 = vmatprep.subr.bf16.mxu0 %v3384_v22  ;;  %2433 = vmatprep.subr.bf16.mxu1 %v3387_v24  ;;  %v3400_v22 = vld [vmem:[#allocation9 + $0xa0] ss:$16 sps:$4 sm:$0xff]   ;;  %v3408_v24 = vld [vmem:[#allocation9 + $0x84] ss:$16 sps:$4 sm:$0xff]  }
 0x2ce   :  { %2393 = vmatpush1.bf16.msra.mxu0 %v3382_v25  ;;  %2434 = vmatpush1.bf16.msra.mxu1 %v3385_v26  ;;  %v3411_v25 = vld [vmem:[#allocation9 + $0x8c] ss:$16 sps:$4 sm:$0xff]   ;;  %v3406_v26 = vld [vmem:[#allocation9 + $0x80] ss:$16 sps:$4 sm:$0xff]  }
 0x2cf   :  { %2726 = vmatprep.subr.bf16.mxu0 %v3390_v15  ;;  %2769 = vmatprep.subr.bf16.mxu1 %v3393_v54 }
 0x370   :  { %v2077_v27 = vpop.f32.mrf.mxu0  ;;  %v2118_v28 = vpop.f32.mrf.mxu1 }
 0x371   :  { %v2126_v29 = vrot.slane %v2077_v27, 2  ;;  %v2140_v41 = vrot.slane %v2118_v28, 4  ;;  %v3409_v27 = vld [vmem:[#allocation9 + $0x88] ss:$16 sps:$4 sm:$0xff]  }
 0x372   :  { %v2079_v30 = vpop.f32.mrf.mxu0  ;;  %v2120_v31 = vpop.f32.mrf.mxu1 }
 0x373   :  { %v2128_v20 = vadd.f32 %v2126_v29, %v2118_v28  ;;  %v2130_v32 = vrot.slane %v2120_v31, 6  ;;  %v3414_v28 = vld [vmem:[#allocation9 + $0x64] ss:$16 sps:$4 sm:$0xff]   ;;  %v3417_v29 = vld [vmem:[#allocation9 + $0x6c] ss:$16 sps:$4 sm:$0xff]  }
 0x374   :  { %v2081_v21 = vpop.f32.mrf.mxu0  ;;  %v2122_v34 = vpop.f32.mrf.mxu1  ;;  %v3415_v31 = vld [vmem:[#allocation9 + $0x68] ss:$16 sps:$4 sm:$0xff]  }
 0x375   :  { %v2134_v35 = vrot.slane %v2128_v20, 6  ;;  %v2132_v36 = vadd.f32 %v2130_v32, %v2079_v30  ;;  %v3420_v20 = vld [vmem:[#allocation9 + $0x44] ss:$16 sps:$4 sm:$0xff]   ;;  %v3423_v32 = vld [vmem:[#allocation9 + $0x4c] ss:$16 sps:$4 sm:$0xff]  }
 0x376   :  { %v2082_v44 = vpop.f32.mrf.mxu0  ;;  %v2123_v37 = vpop.f32.mrf.mxu1  ;;  %v3418_v21 = vld [vmem:[#allocation9 + $0x40] ss:$16 sps:$4 sm:$0xff]   ;;  %v3421_v34 = vld [vmem:[#allocation9 + $0x48] ss:$16 sps:$4 sm:$0xff]  }
 0x377   :  { %v2142_v38 = vsel %vm395_vm0, %v2079_v30, %v2134_v35  ;;  %v2137_v39 = vrot.slane %v2132_v36, 6  ;;  %v3412_v30 = vld [vmem:[#allocation9 + $0x60] ss:$16 sps:$4 sm:$0xff]   ;;  %v3426_v35 = vld [vmem:[#allocation9 + $0x24] ss:$16 sps:$4 sm:$0xff]  }
 0x378   :  { %v3429_v36 = vld [vmem:[#allocation9 + $0x2c] ss:$16 sps:$4 sm:$0xff]   ;;  %v3424_v44 = vld [vmem:[#allocation9 + $0x20] ss:$16 sps:$4 sm:$0xff]   ;;  %v3427_v37 = vld [vmem:[#allocation9 + $0x28] ss:$16 sps:$4 sm:$0xff]  }
 0x379   :  { %v2143_v42 = vsel %vm1544_vm1, %v2142_v38, %v2137_v39  ;;  %v3432_v38 = vld [vmem:[#allocation9 + $0x4] ss:$16 sps:$4 sm:$0xff]   ;;  %v3435_v39 = vld [vmem:[#allocation9 + $0xc] ss:$16 sps:$4 sm:$0xff]  }
 0x37a   :  { %v2145_v43 = vsel %vm2144_vm2, %v2143_v42, %v2140_v41  ;;  %v3430_v41 = vld [vmem:[#allocation9] ss:$16 sps:$4 sm:$0xff]   ;;  %v3433_v42 = vld [vmem:[#allocation9 + $0x8] ss:$16 sps:$4 sm:$0xff]  }
 0x37b   :  { %v2146_v47 = vrot.slane %v2145_v43, 4  ;;  %v2153_v51 = vmul.f32 %v2145_v43, %v2145_v43 }
 0x37d   :  { %v2147_v52 = vadd.f32 %v2146_v47, %v2145_v43  ;;  %v2154_v55 = vrot.slane %v2153_v51, 4 }
 0x37f   :  { %v2148_v56 = vrot.slane %v2147_v52, 2  ;;  %v2155_v57 = vadd.f32 %v2154_v55, %v2153_v51 }
 0x381   :  { %v2149_v58 = vadd.f32 %v2148_v56, %v2147_v52  ;;  %v2156_v60 = vrot.slane %v2155_v57, 2 }
 0x383   :  { %v2150_v61 = vrot.slane %v2149_v58, 1  ;;  %v2157_v63 = vadd.f32 %v2156_v60, %v2155_v57 }
 0x385   :  { %v2158_v59 = vrot.slane %v2157_v63, 1  ;;  %v2151_v49 = vadd.f32 %v2150_v61, %v2149_v58 }
 0x387   :  { %v2159_v23 = vadd.f32 %v2158_v59, %v2157_v63  ;;  %v2152_v1 = vmul.f32 0.125, %v2151_v49 }
 0x389   :  { %v2160_v2 = vmul.f32 0.125, %v2159_v23  ;;  %v2161_v40 = vmul.f32 %v2152_v1, %v2152_v1 }
 0x38b   :  { %v2162_v3 = vsub.f32 %v2160_v2, %v2161_v40 }
 0x38d   :  { %v2164_v4 = vadd.f32 1e-05, %v2162_v3 }
 0x38f   :  { %3448 = vrsqrt.f32 %v2164_v4 }
 0x39c   :  { %v3449_v50 = vpop.eup %3448 }
 0x39d   :  { %v2166_v48 = vmul.f32 %v3449_v50, %v2163_v5 }
 0x39f   :  { %v2168_v6 = vmul.f32 %v2166_v48, %v2152_v1  ;;  %v2174_v7 = vrot.slane %v2166_v48, %v3740_v33 }
 0x3a1   :  { %v2169_v8 = vsub.f32 %v2167_v62, %v2168_v6  ;;  %v2176_v9 = vmul.f32 %v2174_v7, %v2145_v43 }
 0x3a3   :  { %v2181_v10 = vrot.slane %v2169_v8, %v3740_v33 }
 0x3a5   :  { %v2183_v11 = vadd.f32 %v2181_v10, %v2176_v9 }
 0x3a7   :  { %v2184_v12 = vmax.f32 %v2183_v11, 0.0 }
 0x3a9   :  { %v2185_v13 = vpack.c.bf16 %v2184_v12, %v2184_v12 }
 0x3ab   :  { %2411 = vmatmul.mubr.bf16.vlgmr.msra.gmra.mxu0 %v2185_v13  ;;  %2452 = vmatmul.mubr.bf16.vlgmr.msra.gmra.mxu1 %v2185_v13 }
 0x3ac   :  { %2758 = vmatprep.mubr.bf16.mxu0 %v3575_v0  ;;  %2801 = vmatprep.mubr.bf16.mxu1 %v3575_v0  ;;  %v3403_v0 = vld [vmem:[#allocation9 + $0xa8] ss:$16 sps:$4 sm:$0xff]  }
 0x3ad   :  { %2727 = vmatpush1.bf16.msra.mxu0 %v3388_v14  ;;  %2770 = vmatpush1.bf16.msra.mxu1 %v3391_v16 }
 0x3ae   :  { %2728 = vmatprep.subr.bf16.mxu0 %v3396_v17  ;;  %2771 = vmatprep.subr.bf16.mxu1 %v3399_v53 }
 0x3b1   :  { %2729 = vmatpush1.bf16.msra.mxu0 %v3394_v18  ;;  %2772 = vmatpush1.bf16.msra.mxu1 %v3397_v45 }
 0x3b2   :  { %2730 = vmatprep.subr.bf16.mxu0 %v3402_v19  ;;  %2773 = vmatprep.subr.bf16.mxu1 %v3405_v46 }
 0x3b5   :  { %2731 = vmatpush1.bf16.msra.mxu0 %v3400_v22  ;;  %2774 = vmatpush1.bf16.msra.mxu1 %v3403_v0 }
 0x3b6   :  { %2732 = vmatprep.subr.bf16.mxu0 %v3408_v24  ;;  %2775 = vmatprep.subr.bf16.mxu1 %v3411_v25 }
 0x3b9   :  { %2733 = vmatpush1.bf16.msra.mxu0 %v3406_v26  ;;  %2776 = vmatpush1.bf16.msra.mxu1 %v3409_v27  ;;  %v2508_v26 = vld [vmem:[%s3860_s11] sm:$0x1] }
 0x3ba   :  { %2734 = vmatprep.subr.bf16.mxu0 %v3414_v28  ;;  %2777 = vmatprep.subr.bf16.mxu1 %v3417_v29  ;;  %v2512_v29 = vld [vmem:[%s3861_s12] sm:$0x1] }
 0x3bd   :  { %2735 = vmatpush1.bf16.msra.mxu0 %v3412_v30  ;;  %2778 = vmatpush1.bf16.msra.mxu1 %v3415_v31 }
 0x3be   :  { %2736 = vmatprep.subr.bf16.mxu0 %v3420_v20  ;;  %2779 = vmatprep.subr.bf16.mxu1 %v3423_v32 }
 0x3c1   :  { %2737 = vmatpush1.bf16.msra.mxu0 %v3418_v21  ;;  %2780 = vmatpush1.bf16.msra.mxu1 %v3421_v34 }
 0x3c2   :  { %2738 = vmatprep.subr.bf16.mxu0 %v3426_v35  ;;  %2781 = vmatprep.subr.bf16.mxu1 %v3429_v36 }
 0x3c5   :  { %2739 = vmatpush1.bf16.msra.mxu0 %v3424_v44  ;;  %2782 = vmatpush1.bf16.msra.mxu1 %v3427_v37 }
 0x3c6   :  { %2740 = vmatprep.subr.bf16.mxu0 %v3432_v38  ;;  %2783 = vmatprep.subr.bf16.mxu1 %v3435_v39 }
 0x3c9   :  { %2741 = vmatpush1.bf16.msra.mxu0 %v3430_v41  ;;  %2784 = vmatpush1.bf16.msra.mxu1 %v3433_v42 }
 0x46b   :  { %v2412_v43 = vpop.f32.mrf.mxu0  ;;  %v2453_v47 = vpop.f32.mrf.mxu1 }
 0x46c   :  { %v2461_v51 = vrot.slane %v2412_v43, 2 }
 0x46d   :  { %v2414_v52 = vpop.f32.mrf.mxu0  ;;  %v2455_v55 = vpop.f32.mrf.mxu1 }
 0x46e   :  { %v2463_v56 = vadd.f32 %v2461_v51, %v2453_v47  ;;  %v2465_v57 = vrot.slane %v2455_v55, 6 }
 0x46f   :  { %v2416_v58 = vpop.f32.mrf.mxu0  ;;  %v2457_v60 = vpop.f32.mrf.mxu1 }
 0x470   :  { %v2469_v61 = vrot.slane %v2463_v56, 6  ;;  %v2467_v63 = vadd.f32 %v2465_v57, %v2414_v52  ;;  %v2478_v59 = vrot.slane %v2463_v56, 2  ;;  %v2474_v4 = vrot.slane %v2463_v56, 4 }
 0x471   :  { %v2417_v49 = vpop.f32.mrf.mxu0  ;;  %v2458_v23 = vpop.f32.mrf.mxu1 }
 0x472   :  { %v2482_v1 = vsel %vm395_vm0, %v2414_v52, %v2469_v61  ;;  %v2472_v2 = vrot.slane %v2467_v63, 6  ;;  %v2476_v40 = vrot.slane %v2467_v63, 4  ;;  %v2480_v3 = vrot.slane %v2467_v63, 2 }
 0x474   :  { %v2483_v5 = vsel %vm1544_vm1, %v2482_v1, %v2472_v2  ;;  %v2485_v50 = vsel %vm395_vm0, %v2476_v40, %v2478_v59  ;;  %v3184_v40 = vld [vmem:[%s3863_s14] ss:$0 sm:$0xff] }
 0x475   :  { %v2484_v48 = vsel %vm2144_vm2, %v2483_v5, %v2474_v4  ;;  %v2486_v62 = vsel %vm1544_vm1, %v2485_v50, %v2480_v3 }
 0x476   :  { %v2487_v6 = vsel %vm2144_vm2, %v2486_v62, %v2453_v47  ;;  %v2496_v7 = vmul.f32 %v2484_v48, %v2484_v48 }
 0x477   :  { %v2488_v8 = vadd.f32 %v2487_v6, %v2484_v48  ;;  %v2497_v9 = vmul.f32 %v2487_v6, %v2487_v6 }
 0x479   :  { %v2489_v10 = vrot.slane %v2488_v8, 4  ;;  %v2498_v11 = vadd.f32 %v2497_v9, %v2496_v7 }
 0x47b   :  { %v2490_v12 = vadd.f32 %v2489_v10, %v2488_v8  ;;  %v2499_v13 = vrot.slane %v2498_v11, 4 }
 0x47d   :  { %v2491_v14 = vrot.slane %v2490_v12, 2  ;;  %v2500_v15 = vadd.f32 %v2499_v13, %v2498_v11 }
 0x47f   :  { %v2492_v16 = vadd.f32 %v2491_v14, %v2490_v12  ;;  %v2501_v54 = vrot.slane %v2500_v15, 2 }
 0x481   :  { %v2502_v17 = vadd.f32 %v2501_v54, %v2500_v15  ;;  %v2493_v53 = vrot.slane %v2492_v16, 1 }
 0x483   :  { %v2503_v18 = vrot.slane %v2502_v17, 1  ;;  %v2494_v45 = vadd.f32 %v2493_v53, %v2492_v16 }
 0x485   :  { %v2504_v19 = vadd.f32 %v2503_v18, %v2502_v17  ;;  %v2495_v46 = vmul.f32 0.0625, %v2494_v45 }
 0x487   :  { %v2505_v22 = vmul.f32 0.0625, %v2504_v19  ;;  %v2506_v0 = vmul.f32 %v2495_v46, %v2495_v46 }
 0x489   :  { %v2507_v24 = vsub.f32 %v2505_v22, %v2506_v0 }
 0x48b   :  { %v2509_v25 = vadd.f32 1e-05, %v2507_v24 }
 0x48d   :  { %3450 = vrsqrt.f32 %v2509_v25 }
 0x49a   :  { %v3451_v27 = vpop.eup %3450 }
 0x49b   :  { %v2511_v28 = vmul.f32 %v3451_v27, %v2508_v26 }
 0x49d   :  { %v2513_v30 = vmul.f32 %v2511_v28, %v2495_v46  ;;  %v2519_v31 = vrot.slane %v2511_v28, %v3740_v33 }
 0x49f   :  { %v2514_v20 = vsub.f32 %v2512_v29, %v2513_v30  ;;  %v2521_v32 = vmul.f32 %v2519_v31, %v2484_v48  ;;  %v2522_v21 = vmul.f32 %v2519_v31, %v2487_v6 }
 0x4a1   :  { %v2527_v34 = vrot.slane %v2514_v20, %v3740_v33 }
 0x4a3   :  { %v2529_v35 = vadd.f32 %v2527_v34, %v2521_v32  ;;  %v2530_v36 = vadd.f32 %v2527_v34, %v2522_v21 }
 0x4a5   :  { %v2531_v44 = vmax.f32 %v2529_v35, 0.0  ;;  %v2532_v37 = vmax.f32 %v2530_v36, 0.0 }
 0x4a7   :  { %v2533_v38 = vpack.c.bf16 %v2532_v37, %v2531_v44 }
 0x4a9   :  { %2759 = vmatmul.mubr.bf16.vlgmr.msra.gmra.mxu0 %v2533_v38  ;;  %2802 = vmatmul.mubr.bf16.vlgmr.msra.gmra.mxu1 %v2533_v38 }
 0x569   :  { %v2760_v39 = vpop.f32.mrf.mxu0  ;;  %v2803_v41 = vpop.f32.mrf.mxu1 }
 0x56a   :  { %v2813_v42 = vrot.slane %v2760_v39, 2 }
 0x56b   :  { %v2762_v43 = vpop.f32.mrf.mxu0  ;;  %v2805_v47 = vpop.f32.mrf.mxu1 }
 0x56c   :  { %v2815_v51 = vadd.f32 %v2813_v42, %v2803_v41  ;;  %v2817_v52 = vrot.slane %v2805_v47, 6 }
 0x56d   :  { %v2764_v55 = vpop.f32.mrf.mxu0  ;;  %v2807_v56 = vpop.f32.mrf.mxu1 }
 0x56e   :  { %v2831_v57 = vrot.slane %v2815_v51, 6  ;;  %v2819_v58 = vadd.f32 %v2817_v52, %v2762_v43  ;;  %v2840_v60 = vrot.slane %v2815_v51, 2  ;;  %v2821_v33 = vrot.slane %v2764_v55, 2 }
 0x56f   :  { %v2809_v61 = vpop.f32.mrf.mxu1  ;;  %v2766_v1 = vpop.f32.mrf.mxu0  ;;  %v2836_v2 = vrot.slane %v2815_v51, 4 }
 0x570   :  { %v2858_v63 = vsel %vm395_vm0, %v2762_v43, %v2831_v57  ;;  %v2834_v59 = vrot.slane %v2819_v58, 6  ;;  %v2838_v49 = vrot.slane %v2819_v58, 4  ;;  %v2842_v23 = vrot.slane %v2819_v58, 2 }
 0x571   :  { %v2825_v3 = vadd.f32 %v2821_v33, %v2807_v56  ;;  %v2827_v4 = vrot.slane %v2809_v61, 6  ;;  %v2823_v50 = vadd.f32 %v2821_v33, %v2803_v41  ;;  %v2824_v8 = vadd.f32 %v2817_v52, %v2766_v1 }
 0x572   :  { %v2859_v5 = vsel %vm1544_vm1, %v2858_v63, %v2834_v59  ;;  %v2861_v48 = vsel %vm395_vm0, %v2838_v49, %v2840_v60 }
 0x573   :  { %v2860_v62 = vsel %vm2144_vm2, %v2859_v5, %v2836_v2  ;;  %v2862_v6 = vsel %vm1544_vm1, %v2861_v48, %v2842_v23  ;;  %v2845_v7 = vrot.slane %v2825_v3, 6  ;;  %v2829_v11 = vadd.f32 %v2827_v4, %v2766_v1 }
 0x574   :  { %v2863_v9 = vsel %vm2144_vm2, %v2862_v6, %v2823_v50  ;;  %v2877_v10 = vadd.f32 %v3184_v40, %v2860_v62  ;;  %v2854_v13 = vrot.slane %v2825_v3, 2  ;;  %v2850_v17 = vrot.slane %v2825_v3, 4 }
 0x575   :  { %v2878_v12 = vadd.f32 %v3184_v40, %v2863_v9  ;;  %v2864_v14 = vsel %vm395_vm0, %v2824_v8, %v2845_v7  ;;  %v2848_v15 = vrot.slane %v2829_v11, 6  ;;  %v2852_v16 = vrot.slane %v2829_v11, 4 }
 0x576   :  { %3452 = vtanh.f32 %v2877_v10  ;;  %v2856_v54 = vrot.slane %v2829_v11, 2 }
 0x577   :  { %3454 = vtanh.f32 %v2878_v12  ;;  %v2865_v53 = vsel %vm1544_vm1, %v2864_v14, %v2848_v15  ;;  %v2867_v18 = vsel %vm395_vm0, %v2852_v16, %v2854_v13 }
 0x578   :  { %v2866_v45 = vsel %vm2144_vm2, %v2865_v53, %v2850_v17  ;;  %v2868_v19 = vsel %vm1544_vm1, %v2867_v18, %v2856_v54 }
 0x579   :  { %v2869_v46 = vsel %vm2144_vm2, %v2868_v19, %v2807_v56  ;;  %v2879_v22 = vadd.f32 %v3184_v40, %v2866_v45 }
 0x57a   :  { %v2880_v0 = vadd.f32 %v3184_v40, %v2869_v46 }
 0x57b   :  { %3456 = vtanh.f32 %v2879_v22 }
 0x57c   :  { %3458 = vtanh.f32 %v2880_v0 }
 0x583   :  { %v3453_v24 = vpop.eup %3452 }
 0x584   :  { %v3455_v25 = vpop.eup %3454  ;;  %2885 = vst [vmem:[%s3864_s15] sm:$0xff] %v3453_v24 }
 0x585   :  { %2886 = vst [vmem:[%s3864_s15 + $0x8] sm:$0xff] %v3455_v25 }
 0x588   :  { %v3457_v26 = vpop.eup %3456 }
 0x589   :  { %v3459_v27 = vpop.eup %3458  ;;  %2887 = vst [vmem:[%s3864_s15 + $0x10] sm:$0xff] %v3457_v26 }
 0x58a   :  { %2888 = vst [vmem:[%s3864_s15 + $0x18] sm:$0xff] %v3459_v27 }
 0x58b   :  { %2893 = vsyncpa [#allocation3], 1 }
 0x58c   :  { %2894 = vsyncpa [#allocation5], 1 }
 0x58d   :  { %2895 = vsyncpa [#allocation8], 1 }

</bundles_post_ra>
